<compile_context>
chip_gen: v7x
topology: tpu7x:2x2x1
jax: 0.10.0
libtpu: 0.0.40
codegen_flags: <defaults>
</compile_context>

<pallas_src>
import functools

import jax
import jax.numpy as jnp
from jax.experimental import pallas as pl
from jax.experimental.pallas import tpu as pltpu

HEADS = 4
HEAD_DIM1 = 64            # conv1 out_channels per head  -> 256 concat
HEAD_DIM2 = 16            # conv2 out_channels per head  -> 64 concat
NEG_SLOPE_ATT = 0.2       # GATConv internal attention LeakyReLU slope


# ------------------------------------------------------------------ helpers

def _leaky(x, slope):
    return jnp.where(x >= 0, x, slope * x)


def _vmem_limit_bytes():
    cap = 128 * 1024 * 1024
    try:
        cap = int(getattr(pltpu.get_tpu_info(), "vmem_capacity_bytes", cap))
    except Exception:
        pass
    # ~3/4 of physical VMEM (48 MiB on v7x, 96 MiB on v5e/v6e), clamped.
    return max(32 * 1024 * 1024, min(cap * 3 // 4, 128 * 1024 * 1024))


def _pick_block_rows(n):
    for b in (512, 256, 128, 64, 32, 16, 8):
        if n % b == 0:
            return b
    return n


# ------------------------------------------------------------------ kernels

def _transform_kernel(x_ref, w_ref, att_t_ref, expand_ref, scaled_ref, *, head_dim):
    """Linear projection + only-source attention scaling for one GAT layer.

    Produces scaled[N, H*D + H] (bf16):
      scaled[:, h*D:(h+1)*D] = h_feat[:, h*D:(h+1)*D] * exp(e_h - max_h)
      scaled[:, H*D + h]     = exp(e_h - max_h)              (denominator column)
    with e_h[j] = LeakyReLU_0.2(att_src[h] . h_feat[j]).
    """
    hd_total = HEADS * head_dim
    h_feat = jnp.dot(x_ref[...].astype(jnp.bfloat16), w_ref[...],
                     preferred_element_type=jnp.float32)                 # [N, H*D]
    # a_src as h @ att^T -> M is the large dim (review opt. 8).
    a = jnp.dot(h_feat.astype(jnp.bfloat16), att_t_ref[...],
                preferred_element_type=jnp.float32)                      # [N, H]
    a = _leaky(a, NEG_SLOPE_ATT)
    # Global per-head max shift cancels exactly in the softmax ratio.
    s = jnp.exp(a - jnp.max(a, axis=0, keepdims=True))                   # [N, H] in (0,1]
    # Broadcast per-head scale across its D lanes via a tiny f32 matmul (lane dense).
    s_full = jnp.dot(s, expand_ref[...], preferred_element_type=jnp.float32)  # [N, H*D]
    scaled_ref[...] = jnp.concatenate([h_feat * s_full, s],
                                      axis=-1).astype(jnp.bfloat16)      # [N, H*D+H]


def _attn_kernel(adj_ref, scaled_ref, expand_ref, bias_ref, out_ref, *, head_dim):
    """One query-row block of a GAT layer: adj_block @ scaled, normalize, bias, relu."""
    hd_total = HEADS * head_dim
    acc = jnp.dot(adj_ref[...], scaled_ref[...],
                  preferred_element_type=jnp.float32)                    # [B, H*D+H]
    inv = pl.reciprocal(acc[:, hd_total:hd_total + HEADS], approx=True)  # [B, H]
    inv_full = jnp.dot(inv, expand_ref[...],
                       preferred_element_type=jnp.float32)               # [B, H*D]
    out = acc[:, :hd_total] * inv_full + bias_ref[...]
    out_ref[...] = jnp.maximum(out, 0.0)                                 # fused F.relu


def _pool_fc_kernel(pool_ref, x_ref, fcw_ref, fcb_ref, o_ref):
    pooled = jnp.dot(pool_ref[...], x_ref[...].astype(jnp.bfloat16),
                     preferred_element_type=jnp.float32)                 # [G, 64]
    o_ref[...] = (jnp.dot(pooled.astype(jnp.bfloat16), fcw_ref[...],
                          preferred_element_type=jnp.float32) + fcb_ref[...])


# ------------------------------------------------------------------ call wrappers

def _gat_transform(x, w_bf16, att_t_bf16, expand, head_dim):
    n = x.shape[0]
    hd_total = HEADS * head_dim
    kernel = functools.partial(_transform_kernel, head_dim=head_dim)
    return pl.pallas_call(
        kernel,
        out_shape=jax.ShapeDtypeStruct((n, hd_total + HEADS), jnp.bfloat16),
        in_specs=[pl.BlockSpec(memory_space=pltpu.MemorySpace.VMEM)] * 4,
        out_specs=pl.BlockSpec(memory_space=pltpu.MemorySpace.VMEM),
        compiler_params=pltpu.CompilerParams(vmem_limit_bytes=_vmem_limit_bytes()),
    )(x, w_bf16, att_t_bf16, expand)


def _gat_attention(adj_bf16, scaled, expand, bias, head_dim, block_rows):
    n = adj_bf16.shape[0]
    hd_total = HEADS * head_dim
    assert n % block_rows == 0
    kernel = functools.partial(_attn_kernel, head_dim=head_dim)

    flops = 2 * n * n * (hd_total + HEADS) + 2 * n * HEADS * hd_total
    bytes_accessed = (2 * n * n                     # bf16 adjacency (dominant DMA)
                      + 2 * n * (hd_total + HEADS)  # bf16 scaled features
                      + 4 * n * hd_total            # f32 layer output
                      + 4 * (HEADS + 1) * hd_total)

    return pl.pallas_call(
        kernel,
        out_shape=jax.ShapeDtypeStruct((n, hd_total), jnp.float32),
        grid=(n // block_rows,),
        in_specs=[
            pl.BlockSpec((block_rows, n), lambda i: (i, 0)),              # adj rows
            pl.BlockSpec((n, hd_total + HEADS), lambda i: (0, 0)),        # scaled (resident)
            pl.BlockSpec((HEADS, hd_total), lambda i: (0, 0)),            # head expand
            pl.BlockSpec((1, hd_total), lambda i: (0, 0)),                # bias
        ],
        out_specs=pl.BlockSpec((block_rows, hd_total), lambda i: (i, 0)),
        compiler_params=pltpu.CompilerParams(
            dimension_semantics=("parallel",),
            vmem_limit_bytes=_vmem_limit_bytes()),
        cost_estimate=pl.CostEstimate(flops=flops, transcendentals=0,
                                      bytes_accessed=bytes_accessed),
    )(adj_bf16, scaled, expand, bias)


def _pool_fc(pool_bf16, x, fc_w_bf16, fc_b):
    g = pool_bf16.shape[0]
    out_dim = fc_w_bf16.shape[1]
    return pl.pallas_call(
        _pool_fc_kernel,
        out_shape=jax.ShapeDtypeStruct((g, out_dim), jnp.float32),
        in_specs=[pl.BlockSpec(memory_space=pltpu.MemorySpace.VMEM)] * 4,
        out_specs=pl.BlockSpec(memory_space=pltpu.MemorySpace.VMEM),
        compiler_params=pltpu.CompilerParams(vmem_limit_bytes=_vmem_limit_bytes()),
    )(pool_bf16, x, fc_w_bf16, fc_b)


@functools.partial(jax.jit, static_argnames=("block_rows",))
def forward(params, x_feat, adj_bf16, pool_bf16, block_rows=None):
    if block_rows is None:
        block_rows = _pick_block_rows(x_feat.shape[0])
    # conv1 + relu
    scaled1 = _gat_transform(x_feat, params["w1"], params["att1_t"],
                             params["expand1"], HEAD_DIM1)
    h1 = _gat_attention(adj_bf16, scaled1, params["expand1"], params["b1"],
                        HEAD_DIM1, block_rows)
    # conv2 + relu
    scaled2 = _gat_transform(h1, params["w2"], params["att2_t"],
                             params["expand2"], HEAD_DIM2)
    h2 = _gat_attention(adj_bf16, scaled2, params["expand2"], params["b2"],
                        HEAD_DIM2, block_rows)
    # global_mean_pool + fc (tiny follow-up call)
    return _pool_fc(pool_bf16, h2, params["fc_w"], params["fc_b"])


# ------------------------------------------------------------------ params

def _att_transpose(att):
    """[H, D] -> [H*D, H] block-column layout so a_src = h @ att_t (M large)."""
    h, d = att.shape
    out = jnp.zeros((h * d, h), jnp.float32)
    for i in range(h):
        out = out.at[i * d:(i + 1) * d, i].set(att[i])
    return out.astype(jnp.bfloat16)


def _head_expand(head_dim):
    """[H, H*D] 0/1 matrix: row h has ones in columns [h*D, (h+1)*D)."""
    rows = jnp.arange(HEADS)[:, None]
    cols = jnp.arange(HEADS * head_dim)[None, :] // head_dim
    return (rows == cols).astype(jnp.float32)


def init_params(key, num_features, output_dim):
    keys = iter(jax.random.split(key, 8))

    def nrm(shape, s=0.1):
        return (s * jax.random.normal(next(keys), shape)).astype(jnp.float32)

    d1, d2 = HEADS * HEAD_DIM1, HEADS * HEAD_DIM2
    p = {}
    p["w1"] = nrm((num_features, d1)).astype(jnp.bfloat16)
    p["att1_t"] = _att_transpose(nrm((HEADS, HEAD_DIM1)))
    p["b1"] = nrm((1, d1))
    p["w2"] = nrm((d1, d2)).astype(jnp.bfloat16)
    p["att2_t"] = _att_transpose(nrm((HEADS, HEAD_DIM2)))
    p["b2"] = nrm((1, d2))
    p["fc_w"] = nrm((d2, output_dim)).astype(jnp.bfloat16)
    p["fc_b"] = nrm((1, output_dim))
    p["expand1"] = _head_expand(HEAD_DIM1)
    p["expand2"] = _head_expand(HEAD_DIM2)
    return p


# ------------------------------------------------------------------ main

if __name__ == "__main__":
    key = jax.random.PRNGKey(0)
    kp, kx = jax.random.split(key)

    num_graphs = 2
    nodes_per_graph = 8
    num_nodes = num_graphs * nodes_per_graph       # 16
    num_features = 4
    output_dim = 3

    params = init_params(kp, num_features, output_dim)
    x_feat = jax.random.normal(kx, (num_nodes, num_features), jnp.float32)

    # Deterministic edge_index: bidirectional ring inside each graph.
    src, dst = [], []
    for g in range(num_graphs):
        base = g * nodes_per_graph
        for i in range(nodes_per_graph):
            a, b = base + i, base + (i + 1) % nodes_per_graph
            src += [a, b]
            dst += [b, a]
    edge_index = jnp.array([src, dst], dtype=jnp.int32)
    batch = jnp.array([i // nodes_per_graph for i in range(num_nodes)], jnp.int32)

    # self.mask == True: active_edges = edge_index * edge_mask (masked edges -> (0,0)).
    num_edges = edge_index.shape[1]
    edge_mask = (jnp.arange(num_edges) % 5 != 0).astype(jnp.int32)
    active_edges = edge_index * edge_mask[None, :]

    # Dense adjacency adj[target, source] = 1, plus self-loops (GATConv default),
    # shipped as bf16 0/1 — it is the attention matmul LHS directly.
    adj = jnp.zeros((num_nodes, num_nodes), jnp.float32)
    adj = adj.at[active_edges[1], active_edges[0]].set(1.0)
    adj = jnp.maximum(adj, jnp.eye(num_nodes, dtype=jnp.float32))
    adj_bf16 = adj.astype(jnp.bfloat16)

    # global_mean_pool as an averaging matrix [num_graphs, num_nodes].
    onehot = (batch[None, :] == jnp.arange(num_graphs)[:, None]).astype(jnp.float32)
    pool_mat = (onehot / jnp.sum(onehot, axis=1, keepdims=True)).astype(jnp.bfloat16)

    # block_rows=8 -> 2-step "parallel" row-block grid even at this toy size.
    out = forward(params, x_feat, adj_bf16, pool_mat, block_rows=8)
    jax.block_until_ready(out)
    assert out.shape == (num_graphs, output_dim)
    assert bool(jnp.all(jnp.isfinite(out)))
    print("KERNEL_OK")
</pallas_src>

<mosaic_0001>
module attributes {stable_mosaic.version = 11 : i64} {
  func.func @_transform_kernel(%arg0: memref<16x4xf32, #tpu.memory_space<vmem>>, %arg1: memref<4x256xbf16, #tpu.memory_space<vmem>>, %arg2: memref<256x4xbf16, #tpu.memory_space<vmem>>, %arg3: memref<4x256xf32, #tpu.memory_space<vmem>>, %arg4: memref<16x260xbf16, #tpu.memory_space<vmem>>) attributes {dimension_semantics = [], scalar_prefetch = 0 : i64, scratch_operands = 0 : i64, tpu.core_type = #tpu.core_type<tc>} {
    %c0 = arith.constant 0 : index
    %c0_0 = arith.constant 0 : index
    %0 = vector.load %arg0[%c0, %c0_0] : memref<16x4xf32, #tpu.memory_space<vmem>>, vector<16x4xf32>
    %1 = arith.truncf %0 : vector<16x4xf32> to vector<16x4xbf16>
    %c0_1 = arith.constant 0 : index
    %c0_2 = arith.constant 0 : index
    %2 = vector.load %arg1[%c0_1, %c0_2] : memref<4x256xbf16, #tpu.memory_space<vmem>>, vector<4x256xbf16>
    %cst = arith.constant dense<0.000000e+00> : vector<16x256xf32>
    %3 = tpu.matmul %1, %2, %cst {dimension_numbers = #tpu.dot_dimension_numbers<[1], [0], [0], [1], [0, 0, 1, 1], [], []>} : vector<16x4xbf16>, vector<4x256xbf16>, vector<16x256xf32> -> vector<16x256xf32>
    %4 = arith.truncf %3 : vector<16x256xf32> to vector<16x256xbf16>
    %c0_3 = arith.constant 0 : index
    %c0_4 = arith.constant 0 : index
    %5 = vector.load %arg2[%c0_3, %c0_4] : memref<256x4xbf16, #tpu.memory_space<vmem>>, vector<256x4xbf16>
    %cst_5 = arith.constant dense<0.000000e+00> : vector<16x4xf32>
    %6 = tpu.matmul %4, %5, %cst_5 {dimension_numbers = #tpu.dot_dimension_numbers<[1], [0], [0], [1], [0, 0, 1, 1], [], []>} : vector<16x256xbf16>, vector<256x4xbf16>, vector<16x4xf32> -> vector<16x4xf32>
    %cst_6 = arith.constant 0.000000e+00 : f32
    %7 = vector.broadcast %cst_6 : f32 to vector<16x4xf32>
    %8 = arith.cmpf oge, %6, %7 : vector<16x4xf32>
    %cst_7 = arith.constant 2.000000e-01 : f32
    %9 = vector.broadcast %cst_7 : f32 to vector<16x4xf32>
    %10 = arith.mulf %9, %6 : vector<16x4xf32>
    %11 = arith.select %8, %6, %10 : vector<16x4xi1>, vector<16x4xf32>
    %cst_8 = arith.constant dense<0xFF800000> : vector<4xf32>
    %12 = vector.multi_reduction <maximumf>, %11, %cst_8 [0] : vector<16x4xf32> to vector<4xf32>
    %13 = vector.shape_cast %12 : vector<4xf32> to vector<1x4xf32>
    %14 = vector.broadcast %13 : vector<1x4xf32> to vector<16x4xf32>
    %15 = arith.subf %11, %14 : vector<16x4xf32>
    %16 = math.exp %15 : vector<16x4xf32>
    %c0_9 = arith.constant 0 : index
    %c0_10 = arith.constant 0 : index
    %17 = vector.load %arg3[%c0_9, %c0_10] : memref<4x256xf32, #tpu.memory_space<vmem>>, vector<4x256xf32>
    %cst_11 = arith.constant dense<0.000000e+00> : vector<16x256xf32>
    %18 = tpu.matmul %16, %17, %cst_11 {dimension_numbers = #tpu.dot_dimension_numbers<[1], [0], [0], [1], [0, 0, 1, 1], [], []>} : vector<16x4xf32>, vector<4x256xf32>, vector<16x256xf32> -> vector<16x256xf32>
    %19 = arith.mulf %3, %18 : vector<16x256xf32>
    %20 = tpu.concatenate %19, %16 in 1 : vector<16x256xf32>, vector<16x4xf32> -> vector<16x260xf32>
    %21 = arith.truncf %20 : vector<16x260xf32> to vector<16x260xbf16>
    %c0_12 = arith.constant 0 : index
    %c0_13 = arith.constant 0 : index
    %22 = vector.load %arg4[%c0_12, %c0_13] : memref<16x260xbf16, #tpu.memory_space<vmem>>, vector<16x260xbf16>
    tpu.vector_store %arg4[%c0_12, %c0_13], %21 {strides = array<i32>} : memref<16x260xbf16, #tpu.memory_space<vmem>>, vector<16x260xbf16>,
    return
  }
}

module attributes {stable_mosaic.version = 11 : i64} {
  func.func @_attn_kernel(%arg0: i32, %arg1: memref<8x16xbf16, #tpu.memory_space<vmem>>, %arg2: memref<16x260xbf16, #tpu.memory_space<vmem>>, %arg3: memref<4x256xf32, #tpu.memory_space<vmem>>, %arg4: memref<1x256xf32, #tpu.memory_space<vmem>>, %arg5: memref<8x256xf32, #tpu.memory_space<vmem>>) attributes {dimension_semantics = [#tpu.dimension_semantics<parallel>], iteration_bounds = array<i64: 2>, scalar_prefetch = 0 : i64, scratch_operands = 0 : i64, tpu.core_type = #tpu.core_type<tc>, window_params = [{transform_indices = @transform_0, window_bounds = array<i64: 8, 16>}, {pipeline_mode = #tpu.pipeline_mode<synchronous>, transform_indices = @transform_1, window_bounds = array<i64: 16, 260>}, {pipeline_mode = #tpu.pipeline_mode<synchronous>, transform_indices = @transform_2, window_bounds = array<i64: 4, 256>}, {pipeline_mode = #tpu.pipeline_mode<synchronous>, transform_indices = @transform_3, window_bounds = array<i64: 1, 256>}, {transform_indices = @transform_4, window_bounds = array<i64: 8, 256>}]} {
    %c0 = arith.constant 0 : index
    %c0_0 = arith.constant 0 : index
    %0 = vector.load %arg1[%c0, %c0_0] : memref<8x16xbf16, #tpu.memory_space<vmem>>, vector<8x16xbf16>
    %c0_1 = arith.constant 0 : index
    %c0_2 = arith.constant 0 : index
    %1 = vector.load %arg2[%c0_1, %c0_2] : memref<16x260xbf16, #tpu.memory_space<vmem>>, vector<16x260xbf16>
    %cst = arith.constant dense<0.000000e+00> : vector<8x260xf32>
    %2 = tpu.matmul %0, %1, %cst {dimension_numbers = #tpu.dot_dimension_numbers<[1], [0], [0], [1], [0, 0, 1, 1], [], []>} : vector<8x16xbf16>, vector<16x260xbf16>, vector<8x260xf32> -> vector<8x260xf32>
    %3 = vector.extract_strided_slice %2 {offsets = [0, 256], sizes = [8, 4], strides = [1, 1]} : vector<8x260xf32> to vector<8x4xf32>
    %4 = tpu.reciprocal %3 {approx = true} : vector<8x4xf32> -> vector<8x4xf32>
    %c0_3 = arith.constant 0 : index
    %c0_4 = arith.constant 0 : index
    %5 = vector.load %arg3[%c0_3, %c0_4] : memref<4x256xf32, #tpu.memory_space<vmem>>, vector<4x256xf32>
    %cst_5 = arith.constant dense<0.000000e+00> : vector<8x256xf32>
    %6 = tpu.matmul %4, %5, %cst_5 {dimension_numbers = #tpu.dot_dimension_numbers<[1], [0], [0], [1], [0, 0, 1, 1], [], []>} : vector<8x4xf32>, vector<4x256xf32>, vector<8x256xf32> -> vector<8x256xf32>
    %7 = vector.extract_strided_slice %2 {offsets = [0, 0], sizes = [8, 256], strides = [1, 1]} : vector<8x260xf32> to vector<8x256xf32>
    %8 = arith.mulf %7, %6 : vector<8x256xf32>
    %c0_6 = arith.constant 0 : index
    %c0_7 = arith.constant 0 : index
    %9 = vector.load %arg4[%c0_6, %c0_7] : memref<1x256xf32, #tpu.memory_space<vmem>>, vector<1x256xf32>
    %10 = vector.broadcast %9 : vector<1x256xf32> to vector<8x256xf32>
    %11 = arith.addf %8, %10 : vector<8x256xf32>
    %cst_8 = arith.constant 0.000000e+00 : f32
    %12 = vector.broadcast %cst_8 : f32 to vector<8x256xf32>
    %13 = arith.maximumf %11, %12 : vector<8x256xf32>
    %c0_9 = arith.constant 0 : index
    %c0_10 = arith.constant 0 : index
    %14 = vector.load %arg5[%c0_9, %c0_10] : memref<8x256xf32, #tpu.memory_space<vmem>>, vector<8x256xf32>
    tpu.vector_store %arg5[%c0_9, %c0_10], %13 {strides = array<i32>} : memref<8x256xf32, #tpu.memory_space<vmem>>, vector<8x256xf32>,
    return
  }
  func.func @transform_0(%arg0: i32) -> (i32, i32) {
    %c0_i32 = arith.constant 0 : i32
    %c0_i32_0 = arith.constant 0 : i32
    return %arg0, %c0_i32 : i32, i32
  }
  func.func @transform_1(%arg0: i32) -> (i32, i32) {
    %c0_i32 = arith.constant 0 : i32
    %c0_i32_0 = arith.constant 0 : i32
    %c0_i32_1 = arith.constant 0 : i32
    return %c0_i32, %c0_i32_0 : i32, i32
  }
  func.func @transform_2(%arg0: i32) -> (i32, i32) {
    %c0_i32 = arith.constant 0 : i32
    %c0_i32_0 = arith.constant 0 : i32
    %c0_i32_1 = arith.constant 0 : i32
    return %c0_i32, %c0_i32_0 : i32, i32
  }
  func.func @transform_3(%arg0: i32) -> (i32, i32) {
    %c0_i32 = arith.constant 0 : i32
    %c0_i32_0 = arith.constant 0 : i32
    %c0_i32_1 = arith.constant 0 : i32
    return %c0_i32, %c0_i32_0 : i32, i32
  }
  func.func @transform_4(%arg0: i32) -> (i32, i32) {
    %c0_i32 = arith.constant 0 : i32
    %c0_i32_0 = arith.constant 0 : i32
    return %arg0, %c0_i32 : i32, i32
  }
}

module attributes {stable_mosaic.version = 11 : i64} {
  func.func @_transform_kernel(%arg0: memref<16x256xf32, #tpu.memory_space<vmem>>, %arg1: memref<256x64xbf16, #tpu.memory_space<vmem>>, %arg2: memref<64x4xbf16, #tpu.memory_space<vmem>>, %arg3: memref<4x64xf32, #tpu.memory_space<vmem>>, %arg4: memref<16x68xbf16, #tpu.memory_space<vmem>>) attributes {dimension_semantics = [], scalar_prefetch = 0 : i64, scratch_operands = 0 : i64, tpu.core_type = #tpu.core_type<tc>} {
    %c0 = arith.constant 0 : index
    %c0_0 = arith.constant 0 : index
    %0 = vector.load %arg0[%c0, %c0_0] : memref<16x256xf32, #tpu.memory_space<vmem>>, vector<16x256xf32>
    %1 = arith.truncf %0 : vector<16x256xf32> to vector<16x256xbf16>
    %c0_1 = arith.constant 0 : index
    %c0_2 = arith.constant 0 : index
    %2 = vector.load %arg1[%c0_1, %c0_2] : memref<256x64xbf16, #tpu.memory_space<vmem>>, vector<256x64xbf16>
    %cst = arith.constant dense<0.000000e+00> : vector<16x64xf32>
    %3 = tpu.matmul %1, %2, %cst {dimension_numbers = #tpu.dot_dimension_numbers<[1], [0], [0], [1], [0, 0, 1, 1], [], []>} : vector<16x256xbf16>, vector<256x64xbf16>, vector<16x64xf32> -> vector<16x64xf32>
    %4 = arith.truncf %3 : vector<16x64xf32> to vector<16x64xbf16>
    %c0_3 = arith.constant 0 : index
    %c0_4 = arith.constant 0 : index
    %5 = vector.load %arg2[%c0_3, %c0_4] : memref<64x4xbf16, #tpu.memory_space<vmem>>, vector<64x4xbf16>
    %cst_5 = arith.constant dense<0.000000e+00> : vector<16x4xf32>
    %6 = tpu.matmul %4, %5, %cst_5 {dimension_numbers = #tpu.dot_dimension_numbers<[1], [0], [0], [1], [0, 0, 1, 1], [], []>} : vector<16x64xbf16>, vector<64x4xbf16>, vector<16x4xf32> -> vector<16x4xf32>
    %cst_6 = arith.constant 0.000000e+00 : f32
    %7 = vector.broadcast %cst_6 : f32 to vector<16x4xf32>
    %8 = arith.cmpf oge, %6, %7 : vector<16x4xf32>
    %cst_7 = arith.constant 2.000000e-01 : f32
    %9 = vector.broadcast %cst_7 : f32 to vector<16x4xf32>
    %10 = arith.mulf %9, %6 : vector<16x4xf32>
    %11 = arith.select %8, %6, %10 : vector<16x4xi1>, vector<16x4xf32>
    %cst_8 = arith.constant dense<0xFF800000> : vector<4xf32>
    %12 = vector.multi_reduction <maximumf>, %11, %cst_8 [0] : vector<16x4xf32> to vector<4xf32>
    %13 = vector.shape_cast %12 : vector<4xf32> to vector<1x4xf32>
    %14 = vector.broadcast %13 : vector<1x4xf32> to vector<16x4xf32>
    %15 = arith.subf %11, %14 : vector<16x4xf32>
    %16 = math.exp %15 : vector<16x4xf32>
    %c0_9 = arith.constant 0 : index
    %c0_10 = arith.constant 0 : index
    %17 = vector.load %arg3[%c0_9, %c0_10] : memref<4x64xf32, #tpu.memory_space<vmem>>, vector<4x64xf32>
    %cst_11 = arith.constant dense<0.000000e+00> : vector<16x64xf32>
    %18 = tpu.matmul %16, %17, %cst_11 {dimension_numbers = #tpu.dot_dimension_numbers<[1], [0], [0], [1], [0, 0, 1, 1], [], []>} : vector<16x4xf32>, vector<4x64xf32>, vector<16x64xf32> -> vector<16x64xf32>
    %19 = arith.mulf %3, %18 : vector<16x64xf32>
    %20 = tpu.concatenate %19, %16 in 1 : vector<16x64xf32>, vector<16x4xf32> -> vector<16x68xf32>
    %21 = arith.truncf %20 : vector<16x68xf32> to vector<16x68xbf16>
    %c0_12 = arith.constant 0 : index
    %c0_13 = arith.constant 0 : index
    %22 = vector.load %arg4[%c0_12, %c0_13] : memref<16x68xbf16, #tpu.memory_space<vmem>>, vector<16x68xbf16>
    tpu.vector_store %arg4[%c0_12, %c0_13], %21 {strides = array<i32>} : memref<16x68xbf16, #tpu.memory_space<vmem>>, vector<16x68xbf16>,
    return
  }
}

module attributes {stable_mosaic.version = 11 : i64} {
  func.func @_attn_kernel(%arg0: i32, %arg1: memref<8x16xbf16, #tpu.memory_space<vmem>>, %arg2: memref<16x68xbf16, #tpu.memory_space<vmem>>, %arg3: memref<4x64xf32, #tpu.memory_space<vmem>>, %arg4: memref<1x64xf32, #tpu.memory_space<vmem>>, %arg5: memref<8x64xf32, #tpu.memory_space<vmem>>) attributes {dimension_semantics = [#tpu.dimension_semantics<parallel>], iteration_bounds = array<i64: 2>, scalar_prefetch = 0 : i64, scratch_operands = 0 : i64, tpu.core_type = #tpu.core_type<tc>, window_params = [{transform_indices = @transform_0, window_bounds = array<i64: 8, 16>}, {pipeline_mode = #tpu.pipeline_mode<synchronous>, transform_indices = @transform_1, window_bounds = array<i64: 16, 68>}, {pipeline_mode = #tpu.pipeline_mode<synchronous>, transform_indices = @transform_2, window_bounds = array<i64: 4, 64>}, {pipeline_mode = #tpu.pipeline_mode<synchronous>, transform_indices = @transform_3, window_bounds = array<i64: 1, 64>}, {transform_indices = @transform_4, window_bounds = array<i64: 8, 64>}]} {
    %c0 = arith.constant 0 : index
    %c0_0 = arith.constant 0 : index
    %0 = vector.load %arg1[%c0, %c0_0] : memref<8x16xbf16, #tpu.memory_space<vmem>>, vector<8x16xbf16>
    %c0_1 = arith.constant 0 : index
    %c0_2 = arith.constant 0 : index
    %1 = vector.load %arg2[%c0_1, %c0_2] : memref<16x68xbf16, #tpu.memory_space<vmem>>, vector<16x68xbf16>
    %cst = arith.constant dense<0.000000e+00> : vector<8x68xf32>
    %2 = tpu.matmul %0, %1, %cst {dimension_numbers = #tpu.dot_dimension_numbers<[1], [0], [0], [1], [0, 0, 1, 1], [], []>} : vector<8x16xbf16>, vector<16x68xbf16>, vector<8x68xf32> -> vector<8x68xf32>
    %3 = vector.extract_strided_slice %2 {offsets = [0, 64], sizes = [8, 4], strides = [1, 1]} : vector<8x68xf32> to vector<8x4xf32>
    %4 = tpu.reciprocal %3 {approx = true} : vector<8x4xf32> -> vector<8x4xf32>
    %c0_3 = arith.constant 0 : index
    %c0_4 = arith.constant 0 : index
    %5 = vector.load %arg3[%c0_3, %c0_4] : memref<4x64xf32, #tpu.memory_space<vmem>>, vector<4x64xf32>
    %cst_5 = arith.constant dense<0.000000e+00> : vector<8x64xf32>
    %6 = tpu.matmul %4, %5, %cst_5 {dimension_numbers = #tpu.dot_dimension_numbers<[1], [0], [0], [1], [0, 0, 1, 1], [], []>} : vector<8x4xf32>, vector<4x64xf32>, vector<8x64xf32> -> vector<8x64xf32>
    %7 = vector.extract_strided_slice %2 {offsets = [0, 0], sizes = [8, 64], strides = [1, 1]} : vector<8x68xf32> to vector<8x64xf32>
    %8 = arith.mulf %7, %6 : vector<8x64xf32>
    %c0_6 = arith.constant 0 : index
    %c0_7 = arith.constant 0 : index
    %9 = vector.load %arg4[%c0_6, %c0_7] : memref<1x64xf32, #tpu.memory_space<vmem>>, vector<1x64xf32>
    %10 = vector.broadcast %9 : vector<1x64xf32> to vector<8x64xf32>
    %11 = arith.addf %8, %10 : vector<8x64xf32>
    %cst_8 = arith.constant 0.000000e+00 : f32
    %12 = vector.broadcast %cst_8 : f32 to vector<8x64xf32>
    %13 = arith.maximumf %11, %12 : vector<8x64xf32>
    %c0_9 = arith.constant 0 : index
    %c0_10 = arith.constant 0 : index
    %14 = vector.load %arg5[%c0_9, %c0_10] : memref<8x64xf32, #tpu.memory_space<vmem>>, vector<8x64xf32>
    tpu.vector_store %arg5[%c0_9, %c0_10], %13 {strides = array<i32>} : memref<8x64xf32, #tpu.memory_space<vmem>>, vector<8x64xf32>,
    return
  }
  func.func @transform_0(%arg0: i32) -> (i32, i32) {
    %c0_i32 = arith.constant 0 : i32
    %c0_i32_0 = arith.constant 0 : i32
    return %arg0, %c0_i32 : i32, i32
  }
  func.func @transform_1(%arg0: i32) -> (i32, i32) {
    %c0_i32 = arith.constant 0 : i32
    %c0_i32_0 = arith.constant 0 : i32
    %c0_i32_1 = arith.constant 0 : i32
    return %c0_i32, %c0_i32_0 : i32, i32
  }
  func.func @transform_2(%arg0: i32) -> (i32, i32) {
    %c0_i32 = arith.constant 0 : i32
    %c0_i32_0 = arith.constant 0 : i32
    %c0_i32_1 = arith.constant 0 : i32
    return %c0_i32, %c0_i32_0 : i32, i32
  }
  func.func @transform_3(%arg0: i32) -> (i32, i32) {
    %c0_i32 = arith.constant 0 : i32
    %c0_i32_0 = arith.constant 0 : i32
    %c0_i32_1 = arith.constant 0 : i32
    return %c0_i32, %c0_i32_0 : i32, i32
  }
  func.func @transform_4(%arg0: i32) -> (i32, i32) {
    %c0_i32 = arith.constant 0 : i32
    %c0_i32_0 = arith.constant 0 : i32
    return %arg0, %c0_i32 : i32, i32
  }
}

module attributes {stable_mosaic.version = 11 : i64} {
  func.func @_pool_fc_kernel(%arg0: memref<2x16xbf16, #tpu.memory_space<vmem>>, %arg1: memref<16x64xf32, #tpu.memory_space<vmem>>, %arg2: memref<64x3xbf16, #tpu.memory_space<vmem>>, %arg3: memref<1x3xf32, #tpu.memory_space<vmem>>, %arg4: memref<2x3xf32, #tpu.memory_space<vmem>>) attributes {dimension_semantics = [], scalar_prefetch = 0 : i64, scratch_operands = 0 : i64, tpu.core_type = #tpu.core_type<tc>} {
    %c0 = arith.constant 0 : index
    %c0_0 = arith.constant 0 : index
    %0 = vector.load %arg0[%c0, %c0_0] : memref<2x16xbf16, #tpu.memory_space<vmem>>, vector<2x16xbf16>
    %c0_1 = arith.constant 0 : index
    %c0_2 = arith.constant 0 : index
    %1 = vector.load %arg1[%c0_1, %c0_2] : memref<16x64xf32, #tpu.memory_space<vmem>>, vector<16x64xf32>
    %2 = arith.truncf %1 : vector<16x64xf32> to vector<16x64xbf16>
    %cst = arith.constant dense<0.000000e+00> : vector<2x64xf32>
    %3 = tpu.matmul %0, %2, %cst {dimension_numbers = #tpu.dot_dimension_numbers<[1], [0], [0], [1], [0, 0, 1, 1], [], []>} : vector<2x16xbf16>, vector<16x64xbf16>, vector<2x64xf32> -> vector<2x64xf32>
    %4 = arith.truncf %3 : vector<2x64xf32> to vector<2x64xbf16>
    %c0_3 = arith.constant 0 : index
    %c0_4 = arith.constant 0 : index
    %5 = vector.load %arg2[%c0_3, %c0_4] : memref<64x3xbf16, #tpu.memory_space<vmem>>, vector<64x3xbf16>
    %cst_5 = arith.constant dense<0.000000e+00> : vector<2x3xf32>
    %6 = tpu.matmul %4, %5, %cst_5 {dimension_numbers = #tpu.dot_dimension_numbers<[1], [0], [0], [1], [0, 0, 1, 1], [], []>} : vector<2x64xbf16>, vector<64x3xbf16>, vector<2x3xf32> -> vector<2x3xf32>
    %c0_6 = arith.constant 0 : index
    %c0_7 = arith.constant 0 : index
    %7 = vector.load %arg3[%c0_6, %c0_7] : memref<1x3xf32, #tpu.memory_space<vmem>>, vector<1x3xf32>
    %8 = vector.broadcast %7 : vector<1x3xf32> to vector<2x3xf32>
    %9 = arith.addf %6, %8 : vector<2x3xf32>
    %c0_8 = arith.constant 0 : index
    %c0_9 = arith.constant 0 : index
    %10 = vector.load %arg4[%c0_8, %c0_9] : memref<2x3xf32, #tpu.memory_space<vmem>>, vector<2x3xf32>
    tpu.vector_store %arg4[%c0_8, %c0_9], %9 {strides = array<i32>} : memref<2x3xf32, #tpu.memory_space<vmem>>, vector<2x3xf32>,
    return
  }
}

</mosaic_0001>

<bundles_post_ra>
// kernel: forward.6
= control target key start
LH: loop header
LB: loop body
LE: loop exit
PB: predicated region body
PF: predicated region fallthrough
CT: control target
= control target key end

     0   :  { %9 = vsyncpa [#allocation3], 0  ;;  %s1183_s0 = inlined_call_operand.hbm [shape: bf16[16,16], index: 0, kind: input, shape index: {}]   ;;  %s1184_s1 = inlined_call_operand.hbm [shape: bf16[16,260], index: 1, kind: input, shape index: {}]   ;;  %s1185_s2 = inlined_call_operand.hbm [shape: f32[4,256], index: 2, kind: input, shape index: {}]   ;;  %s1186_s3 = inlined_call_operand.hbm [shape: f32[1,256], index: 3, kind: input, shape index: {}]   ;;  %s1187_s4 = inlined_call_operand.hbm [shape: f32[16,256], index: 4, kind: output, shape index: {}]  }
   0x1   :  { %11 = vsyncpa [#allocation3 + $0x1], 0 }
   0x2   :  { %12 = vsyncpa [#allocation6], 0 }
   0x3   :  { %13 = vsyncpa [#allocation9], 0 }
   0x4   :  { %14 = vsyncpa [#allocation4], 0 }
   0x5   :  { %16 = vsyncpa [#allocation4 + $0x1], 0  ;;  %s928_s15 = smov 0   ;;  %s930_s16 = smov 0  }
   0x6   :  { %s932_s17 = smov 0   ;;  %s934_s18 = smov 0  }
   0x7 LB: > { %s949_s19 = sadd.s32 4294967295, %s891_s18   ;;  %s578_s20 = sadd.s32 4294967294, %s891_s18   ;;  %s891_s18 = sphi %s934_s18, %s1210_s18   ;;  %s887_s17 = sphi %s932_s17, %s1209_s17   ;;  %s883_s16 = sphi %s930_s16, %s1208_s16   ;;  %s879_s15 = sphi %s928_s15, %s1207_s15  }
   0x8   : > { %p42_p0 = scmp.ne.s32.totalorder %s883_s16, %s879_s15  ;;  %p1188_p1 = scmp.eq.s32.totalorder %s949_s19, 0 }
   0x9   : > { %p135_p3 = scmp.eq.s32.totalorder %s578_s20, 1  ;;  %p579_p5 = scmp.ge.s32.totalorder %s891_s18, 1 }
   0xa   : > { %p958_p4 = por %p1188_p1, %p42_p0  ;;  %p142_p7 = scmp.lt.s32.totalorder %s891_s18, 3 }
   0xb   : > { %p963_p6 = por %p135_p3, %p42_p0  ;;  %s893_s24 = smov [#allocation5]  }
   0xc   : > { %s1191_s21 = scalar_select %p958_p4, 1, 0 }
   0xd   : > { %s1192_s22 = scalar_select %p963_p6, 1, 0 }
   0xe   : > { %p968_p8 = pnand %p579_p5, %p142_p7  ;;  %s154_s25 = sshll.u32 %s893_s24, 4  ;;  %s972_s25 = int_to_ptr.vmem [resolvable:$true] %s154_s25 }
   0xf   : > { %s894_s27 = smov [#allocation7]   ;;  %s895_s29 = smov [#allocation8]  }
  0x10   : > { %s1193_s23 = scalar_select %p968_p8, 1, 0 }
  0x11   : > { %p630_p9 = pneg %p968_p8  ;;  %s168_s28 = sshll.u32 %s894_s27, 4  ;;  %s983_s28 = int_to_ptr.vmem [resolvable:$true] %s168_s28 }
  0x12   : > { %s985_s30 = sshll.u32 %s895_s29, 4  ;;  %s703_s7 = scalar_lea.hbm %s1184_s1, 384  ;;  %s180_s30 = int_to_ptr.vmem [resolvable:$true] %s985_s30 }
  0x13   : > { %p979_p11 = pnand %p630_p9, %p1188_p1  ;;  %p704_p12 = scmp.ne.s32.totalorder %s1184_s1, %s703_s7 }
  0x14   : > { %p710_p5 = scmp.lt.u32.totalorder %s703_s7, %s1184_s1 }
  0x15   : > { %p995_p13 = pneg %p979_p11 }
  0x17   : > { %p706_p0 = pnand %p995_p13, %p704_p12 }
  0x19   : > { %p707_p3 = pneg %p706_p0 }
  0x1b   : > { %p712_p7 = pnand %p710_p5, %p707_p3 }
  0x1d   : > { %715 = shalt.err (!%p712_p7)
}
  0x1e   : > { %s716_s13 = scalar_lea.vmem %s972_s25, 384  ;;  %p724_p2 = scmp.lt.s32.totalorder %s972_s25, %s972_s25 }
  0x1f   : > { %p717_p9 = scmp.ne.s32.totalorder %s972_s25, %s716_s13  ;;  %p725_p6 = scmp.lt.s32.totalorder %s716_s13, %s716_s13 }
  0x21   : > { %p719_p10 = pnand %p717_p9, %p995_p13  ;;  %p726_p12 = por %p725_p6, %p724_p2 }
  0x23   : > { %p720_p1 = pneg %p719_p10 }
  0x25   : > { %p727_p0 = pnand %p726_p12, %p720_p1 }
  0x27   : > { %730 = shalt.err (!%p727_p0)
}
  0x28   : > { %s896_s14 = smov 192   ;;  %s897_s20 = smov 12  }
  0x29   : > { %633 = dma.hbm_to_vmem [thread:$0]  (!%p979_p11), %s1184_s1, 384, %s972_s25, [#allocation6], %s896_s14, %s896_s14, %s897_s20  }
  0x2a   : > { %s731_s6 = scalar_lea.hbm %s1185_s2, 128 }
  0x2b   : > { %p732_p2 = scmp.ne.s32.totalorder %s1185_s2, %s731_s6  ;;  %p738_p10 = scmp.lt.u32.totalorder %s731_s6, %s1185_s2 }
  0x2d   : > { %p734_p1 = pnand %p732_p2, %p995_p13 }
  0x2f   : > { %p735_p6 = pneg %p734_p1 }
  0x31   : > { %p740_p3 = pnand %p738_p10, %p735_p6 }
  0x33   : > { %743 = shalt.err (!%p740_p3)
}
  0x34   : > { %s744_s25 = scalar_lea.vmem %s983_s28, 128  ;;  %p752_p12 = scmp.lt.s32.totalorder %s983_s28, %s983_s28 }
  0x35   : > { %p745_p5 = scmp.ne.s32.totalorder %s983_s28, %s744_s25  ;;  %p753_p0 = scmp.lt.s32.totalorder %s744_s25, %s744_s25 }
  0x37   : > { %p747_p7 = pnand %p745_p5, %p995_p13  ;;  %p754_p2 = por %p753_p0, %p752_p12 }
  0x39   : > { %p748_p9 = pneg %p747_p7 }
  0x3b   : > { %p755_p1 = pnand %p754_p2, %p748_p9 }
  0x3d   : > { %758 = shalt.err (!%p755_p1)
}
  0x3e   : > { %636 = dma.hbm_to_vmem [thread:$0]  (!%p979_p11), %s1185_s2, 128, %s983_s28, [#allocation6]  }
  0x3f   : > { %s759_s24 = scalar_lea.hbm %s1186_s3, 32 }
  0x40   : > { %p760_p6 = scmp.ne.s32.totalorder %s1186_s3, %s759_s24  ;;  %p766_p5 = scmp.lt.u32.totalorder %s759_s24, %s1186_s3 }
  0x42   : > { %p762_p10 = pnand %p760_p6, %p995_p13 }
  0x44   : > { %p763_p3 = pneg %p762_p10 }
  0x46   : > { %p768_p7 = pnand %p766_p5, %p763_p3 }
  0x48   : > { %771 = shalt.err (!%p768_p7)
}
  0x49   : > { %s772_s7 = scalar_lea.vmem %s180_s30, 32  ;;  %p780_p2 = scmp.lt.s32.totalorder %s180_s30, %s180_s30 }
  0x4a   : > { %p773_p9 = scmp.ne.s32.totalorder %s180_s30, %s772_s7  ;;  %p781_p1 = scmp.lt.s32.totalorder %s772_s7, %s772_s7 }
  0x4c   : > { %p775_p12 = pnand %p773_p9, %p995_p13  ;;  %p782_p4 = por %p781_p1, %p780_p2 }
  0x4e   : > { %p776_p0 = pneg %p775_p12 }
  0x50   : > { %p783_p8 = pnand %p782_p4, %p776_p0 }
  0x52   : > { %786 = shalt.err (!%p783_p8)
}
  0x53   : > { %639 = dma.hbm_to_vmem [thread:$0]  (!%p979_p11), %s1186_s3, 32, %s180_s30, [#allocation9]  }
  0x54   : > { %s1059_s10 = sadd.s32 1, %s891_s18   ;;  %s29_s26 = sadd.s32 1, %s887_s17 }
  0x55   : > { %s26_s9 = ssub.s32 %s891_s18, %s1059_s10  ;;  %p36_p8 = scmp.ne.s32.totalorder %s887_s17, %s883_s16 }
  0x56   : > { %p27_p4 = scmp.eq.s32.totalorder %s26_s9, 0  ;;  %p37_p13 = scmp.eq.s32.totalorder %s891_s18, 0 }
  0x57   : > { %p651_p6 = scmp.lt.s32.totalorder %s891_s18, 2  ;;  %p1196_p3 = scmp.eq.s32.totalorder %s949_s19, 1 }
  0x58   : > { %s1069_s11 = scalar_select %p27_p4, %s887_s17, %s29_s26  }
  0x59   : > { %p38_p10 = por %p37_p13, %p36_p8  ;;  %p1073_p5 = por %p1196_p3, %p36_p8 }
  0x5a   : > { %s190_s12 = sand.u32 1, %s887_s17   ;;  %s585_s13 = sshll.u32 %s891_s18, 6 }
  0x5b   : > { %s584_s30 = sshll.u32 %s190_s12, 2  ;;  %s1082_s24 = scalar_lea.hbm %s1183_s0, %s585_s13 }
  0x5c   : > { %s194_s27 = scalar_lea.vmem [#allocation2], %s584_s30  ;;  %p1084_p11 = pnand %p651_p6, %p38_p10 }
  0x5d   : > { %s201_s29 = sshll.u32 %s194_s27, 4  ;;  %s191_s6 = scalar_lea.sflag [#allocation3], %s190_s12  ;;  %s1088_s29 = int_to_ptr.vmem [resolvable:$true] %s201_s29 }
  0x5e   : > { %s787_s7 = scalar_lea.hbm %s1082_s24, 64  ;;  %p789_p9 = pneg %p1084_p11 }
  0x5f   : > { %p788_p7 = scmp.ne.s32.totalorder %s1082_s24, %s787_s7  ;;  %s792_s9 = scalar_lea.hbm %s1183_s0, 128 }
  0x60   : > { %p793_p2 = scmp.lt.u32.totalorder %s1082_s24, %s1183_s0  ;;  %p794_p1 = scmp.lt.u32.totalorder %s792_s9, %s787_s7 }
  0x61   : > { %p790_p12 = pnand %p789_p9, %p788_p7  ;;  %p796_p8 = scmp.lt.u32.totalorder %s787_s7, %s1082_s24 }
  0x62   : > { %p795_p4 = por %p794_p1, %p793_p2 }
  0x63   : > { %p791_p0 = pneg %p790_p12 }
  0x64   : > { %p797_p13 = por %p796_p8, %p795_p4 }
  0x66   : > { %p798_p6 = pnand %p797_p13, %p791_p0 }
  0x68   : > { %801 = shalt.err (!%p798_p6)
}
  0x69   : > { %s802_s12 = scalar_lea.vmem %s1088_s29, 64  ;;  %s898_s30 = smov [#allocation2]  }
  0x6a   : > { %p803_p10 = scmp.ne.s32.totalorder %s1088_s29, %s802_s12  ;;  %s807_s14 = sshll.u32 %s898_s30, 4  ;;  %s808_s14 = int_to_ptr.vmem [resolvable:$false] %s807_s14 }
  0x6b   : > { %s809_s20 = scalar_lea.vmem %s808_s14, 128  ;;  %p810_p12 = scmp.lt.s32.totalorder %s1088_s29, %s808_s14 }
  0x6c   : > { %p805_p3 = pnand %p803_p10, %p789_p9  ;;  %p811_p2 = scmp.lt.s32.totalorder %s809_s20, %s802_s12 }
  0x6e   : > { %p806_p7 = pneg %p805_p3  ;;  %p812_p1 = por %p811_p2, %p810_p12 }
  0x70   : > { %p813_p4 = pnand %p812_p1, %p806_p7 }
  0x72   : > { %816 = shalt.err (!%p813_p4)
}
  0x73   : > { %643 = dma.hbm_to_vmem [thread:$0]  (!%p1084_p11), %s1082_s24, 64, %s1088_s29, %s191_s6  }
  0x74   : > { %p1199_p0 = scmp.ne.s32.totalorder %s1193_s23, 0 }
  0x75   : > { %s1118_s27 = sand.u32 (!%p1199_p0), 1, %s883_s16   ;;  %p1200_p9 = scmp.ne.s32.totalorder (!%p1199_p0), %s1191_s21, 0 }
  0x76   : > { %210 = sbr.rel (%p1199_p0) target bundleno = 593 (0x251), region = 36  ;;  %s587_s7 = sshll.u32 (!%p1199_p0), %s1118_s27, 2 }
  0x77   : > { %s213_s28 = scalar_lea.sflag (!%p1199_p0), [#allocation3], %s1118_s27  ;;  %s216_s8 = scalar_lea.vmem (!%p1199_p0), [#allocation2], %s587_s7 }
  0x7d   : > { %862 = dma.done.wait (%p1200_p9), %s213_s28, 64  }
  0x7e   : > { %864 = vsyncadd (%p1200_p9), %s213_s28, 4294967232  ;;  %p1201_p8 = scmp.eq.s32.totalorder %s949_s19, 0 }
  0x80   : > { %866 = dma.done.wait (%p1201_p8), [#allocation6], 512   ;;  %p1202_p11 = pmov %p1201_p8 }
  0x81   : > { %p1203_p13 = pmov %p1201_p8 }
  0x82   : > { %868 = vsyncadd (%p1202_p11), [#allocation6], 4294966784 }
  0x83   : > { %870 = dma.done.wait (%p1203_p13), [#allocation9], 32   ;;  %p1204_p6 = pmov %p1201_p8 }
  0x84   : > { %v899_v0 = vmov 0.0   ;;  %vm900_vm0 = vmmov 0   ;;  %v901_v1 = vmov 0   ;;  %v696_v2 = vld [vmem:[#allocation5 + $0x8] ss:$12 sps:$4 sm:$0xff]   ;;  %vm275_vm1 = vcmask 130048  }
  0x85   : > { %872 = vsyncadd (%p1204_p6), [#allocation9], 4294967264  ;;  %608 = vmatprep.subr.bf16.mxu1 %v899_v0  ;;  %610 = vmatprep.mubr.msk.bf16.mxu1 %vm900_vm0, %v899_v0  ;;  %v254_v3 = vld [vmem:[%s216_s8] sm:$0xf]  ;;  %v697_v4 = vld [vmem:[#allocation5 + $0x4] ss:$12 sps:$4 sm:$0xff]   ;;  %v448_v17 = vlaneseq }
  0x86   : > { %311 = vmatprep.mubr.bf16.mxu0 %v901_v1  ;;  %609 = vmatpush3.bf16.msra.mxu1 %v696_v2  ;;  %v699_v5 = vld [vmem:[#allocation5] ss:$12 sps:$4 sm:$0xff]   ;;  %v361_v6 = vld [vmem:[#allocation7] sm:$0xff]  ;;  %vm368_vm2 = vcmask 1043456   ;;  %vm364_vm3 = vcmask 31744   ;;  %s591_s21 = sshll.u32 %s1118_s27, 4 }
  0x87   : > { %279 = vmatprep.subr.bf16.mxu0 %v697_v4  ;;  %v363_v7 = vcombine.high %v361_v6, %v361_v6  ;;  %v449_v18 = vshrl.u32 %v448_v17, 7  ;;  %v446_v20 = vld [vmem:[#allocation8] sm:$0x3]  ;;  %s605_s23 = sshll.u32 %s949_s19, 8  ;;  %s252_s24 = scalar_lea.vmem [#allocation10], %s591_s21 }
  0x88   : > { %280 = vmatpush1.bf16.msra.mxu0 %v699_v5  ;;  %s479_s29 = sshll.u32 %s252_s24, 4  ;;  %s1139_s9 = scalar_lea.hbm %s1187_s4, %s605_s23  ;;  %s1141_s29 = int_to_ptr.vmem [resolvable:$true] %s479_s29 }
  0x89   : > { %611 = vmatmul.mubr.msk.bf16.vlgmr.msra.gmra.mrb[0].mxu1 %vm275_vm1, %v254_v3  ;;  %597 = vmatprep.subr.msk.mxu0 %vm368_vm2, %v363_v7  ;;  %v450_v19 = vsub.s32 0, %v449_v18  ;;  %v454_v21 = vsub.s32 1, %v449_v18  ;;  %s465_s26 = scalar_lea.sflag [#allocation4], %s1118_s27  ;;  %s817_s13 = scalar_lea.vmem %s1141_s29, 256 }
  0x8a   : > { %p818_p10 = scmp.ne.s32.totalorder %s1141_s29, %s817_s13  ;;  %s902_s19 = smov [#allocation10]  }
  0x8b   : > { %595 = vmatmul.mubr.msk.bf16.vlgmr.msra.gmra.mrb[0].mxu0 %vm275_vm1, %v254_v3  ;;  %v451_v22 = vrot.slane %v446_v20, %v450_v19  ;;  %v455_v24 = vrot.slane %v446_v20, %v454_v21  ;;  %s821_s12 = sshll.u32 %s902_s19, 4  ;;  %s822_s12 = int_to_ptr.vmem [resolvable:$false] %s821_s12 }
  0x8c   : > { %437 = vmatprep.mubr.f32.mxu0 %v899_v0  ;;  %598 = vmatpush1.msk.msra.mxu0 %vm368_vm2, %v361_v6  ;;  %p819_p3 = pnand %p818_p10, %p1073_p5  ;;  %s823_s30 = scalar_lea.vmem %s822_s12, 512 }
  0x8d   : > { %p824_p12 = scmp.lt.s32.totalorder %s1141_s29, %s822_s12  ;;  %p825_p2 = scmp.lt.s32.totalorder %s823_s30, %s817_s13 }
  0x8e   : > { %p820_p7 = pneg %p819_p3 }
  0x8f   : > { %p826_p1 = por %p825_p2, %p824_p12 }
  0x91   : > { %p827_p4 = pnand %p826_p1, %p820_p7 }
 0x15c   : > { %v354_v8 = vpop.f32.mrb[0].mxu1 }
 0x15d   : > { %701 = vrcp.f32 %v354_v8  ;;  %v612_v9 = vpop.f32.mrb[1].mxu1 }
 0x15e   : > { %v357_v10 = vpop.f32.mrb[2].mxu1  ;;  %v313_v12 = vpop.f32.mrb[0].mxu0 }
 0x15f   : > { %v613_v11 = vpop.f32.mrb[3].mxu1  ;;  %v315_v13 = vpop.f32.mrb[1].mxu0 }
 0x160   : > { %v317_v14 = vpop.f32.mrb[2].mxu0 }
 0x161   : > { %v318_v15 = vpop.f32.mrb[3].mxu0 }
 0x167   : > { %v702_v16 = vpop.eup %701 }
 0x168   : > { %599 = vmatmul.mubr.msk.f32.vlgmr.msra.gmra.mrb[4].mxu0 %vm364_vm3, %v702_v16 }
 0x23b   : > { %v439_v23 = vpop.f32.mrb[4].mxu0 }
 0x23c   : > { %v444_v25 = vmul.f32 %v439_v23, %v313_v12  ;;  %v441_v26 = vpop.f32.mrb[5].mxu0 }
 0x23d   : > { %v445_v27 = vmul.f32 %v441_v26, %v315_v13 }
 0x23e   : > { %v458_v28 = vadd.f32 %v451_v22, %v444_v25 }
 0x23f   : > { %v459_v29 = vadd.f32 %v455_v24, %v445_v27 }
 0x240   : > { %v460_v30 = vmax.f32 %v458_v28, 0.0 }
 0x241   : > { %v461_v31 = vmax.f32 %v459_v29, 0.0 }
 0x242   : > { %462 = vst [vmem:[%s252_s24] sm:$0xff] %v460_v30 }
 0x243   : > { %463 = vst [vmem:[%s252_s24 + $0x8] sm:$0xff] %v461_v31 }
 0x244   : > { %830 = shalt.err (!%p827_p4)
}
 0x245   : > { %s831_s14 = scalar_lea.hbm %s1139_s9, 256  ;;  %s835_s7 = scalar_lea.hbm %s1187_s4, 512 }
 0x246   : > { %p832_p0 = scmp.ne.s32.totalorder %s1139_s9, %s831_s14  ;;  %p836_p11 = scmp.lt.u32.totalorder %s1139_s9, %s1187_s4 }
 0x247   : > { %p837_p13 = scmp.lt.u32.totalorder %s835_s7, %s831_s14  ;;  %p839_p10 = scmp.lt.u32.totalorder %s831_s14, %s1139_s9 }
 0x248   : > { %p833_p9 = pnand %p832_p0, %p1073_p5 }
 0x249   : > { %p838_p6 = por %p837_p13, %p836_p11 }
 0x24a   : > { %p834_p8 = pneg %p833_p9 }
 0x24b   : > { %p840_p3 = por %p839_p10, %p838_p6 }
 0x24d   : > { %p841_p7 = pnand %p840_p3, %p834_p8 }
 0x24f   : > { %844 = shalt.err (!%p841_p7)
}
 0x250   : > { %628 = dma.vmem_to_hbm [thread:$0]  (%p1073_p5), %s1141_s29, 256, %s1139_s9, %s465_s26  }
 0x251 PF: > { %s491_s21 = sand.u32 1, %s879_s15   ;;  %p1205_p12 = scmp.ne.s32.totalorder %s1192_s22, 0 }
 0x252   : > { %p1206_p2 = scmp.ge.s32.totalorder %s891_s18, 2  ;;  %s492_s23 = scalar_lea.sflag [#allocation4], %s491_s21 }
 0x254   : > { %p645_p1 = pnand %p1206_p2, %p1205_p12 }
 0x256   : > { %874 = dma.done.wait (!%p645_p1), %s492_s23, 256  }
 0x257   : > { %876 = vsyncadd (!%p645_p1), %s492_s23, 4294967040  ;;  %p19_p4 = scmp.ge.s32.totalorder %s1059_s10, 4   ;;  %s1207_s15 = smov %s883_s16 }
 0x258   : > { %s1208_s16 = smov %s887_s17  ;;  %s1209_s17 = smov %s1069_s11 }
 0x259   : > { %s1210_s18 = smov %s1059_s10  ;;  %21 = sbr.rel (!%p19_p4) target bundleno = 7 (0x7), region = 93 }
 0x260   :  { %497 = vsyncpa [#allocation3], 1 }
 0x261   :  { %499 = vsyncpa [#allocation3 + $0x1], 1 }
 0x262   :  { %500 = vsyncpa [#allocation6], 1 }
 0x263   :  { %501 = vsyncpa [#allocation9], 1 }
 0x264   :  { %502 = vsyncpa [#allocation4], 1 }
 0x265   :  { %504 = vsyncpa [#allocation4 + $0x1], 1 }

// kernel: forward.5
= control target key start
LH: loop header
LB: loop body
LE: loop exit
PB: predicated region body
PF: predicated region fallthrough
CT: control target
= control target key end

     0   :  { %9 = vsyncpa [#allocation3], 0  ;;  %s783_s0 = inlined_call_operand.hbm [shape: f32[16,4], index: 0, kind: input, shape index: {}]   ;;  %s784_s1 = inlined_call_operand.hbm [shape: bf16[4,256], index: 1, kind: input, shape index: {}]   ;;  %s785_s2 = inlined_call_operand.hbm [shape: bf16[256,4], index: 2, kind: input, shape index: {}]   ;;  %s786_s3 = inlined_call_operand.hbm [shape: f32[4,256], index: 3, kind: input, shape index: {}]   ;;  %s787_s4 = inlined_call_operand.hbm [shape: bf16[16,260], index: 4, kind: output, shape index: {}]  }
   0x1   :  { %10 = vsyncpa [#allocation6], 0 }
   0x2   :  { %11 = vsyncpa [#allocation9], 0 }
   0x3   :  { %12 = vsyncpa [#allocation4], 0  ;;  %s673_s15 = smov [#allocation5]   ;;  %s674_s17 = smov [#allocation2]  }
   0x4   :  { %s31_s16 = sshll.u32 %s673_s15, 4  ;;  %s18_s18 = sshll.u32 %s674_s17, 4  ;;  %s32_s16 = int_to_ptr.vmem [resolvable:$true] %s31_s16  ;;  %s711_s18 = int_to_ptr.vmem [resolvable:$true] %s18_s18 }
   0x5   :  { %s555_s21 = scalar_lea.hbm %s784_s1, 64 }
   0x6   :  { %p556_p0 = scmp.ne.s32.totalorder %s784_s1, %s555_s21  ;;  %p559_p1 = scmp.lt.u32.totalorder %s555_s21, %s784_s1 }
   0x8   :  { %p561_p2 = pnand %p559_p1, %p556_p0 }
   0xa   :  { %564 = shalt.err (!%p561_p2)
}
   0xb   :  { %s565_s26 = scalar_lea.vmem %s32_s16, 64  ;;  %p570_p4 = scmp.lt.s32.totalorder %s32_s16, %s32_s16 }
   0xc   :  { %p566_p3 = scmp.ne.s32.totalorder %s32_s16, %s565_s26  ;;  %p571_p5 = scmp.lt.s32.totalorder %s565_s26, %s565_s26 }
   0xe   :  { %p572_p6 = por %p571_p5, %p570_p4 }
  0x10   :  { %p573_p7 = pnand %p572_p6, %p566_p3 }
  0x12   :  { %576 = shalt.err (!%p573_p7)
}
  0x13   :  { %34 = dma.hbm_to_vmem [thread:$0]  %s784_s1, 64, %s32_s16, [#allocation6]  }
  0x14   :  { %s577_s5 = scalar_lea.hbm %s783_s0, 256 }
  0x15   :  { %p578_p8 = scmp.ne.s32.totalorder %s783_s0, %s577_s5  ;;  %p581_p9 = scmp.lt.u32.totalorder %s577_s5, %s783_s0 }
  0x17   :  { %p583_p10 = pnand %p581_p9, %p578_p8 }
  0x19   :  { %586 = shalt.err (!%p583_p10)
}
  0x1a   :  { %s587_s10 = scalar_lea.vmem %s711_s18, 256  ;;  %p592_p12 = scmp.lt.s32.totalorder %s711_s18, %s711_s18 }
  0x1b   :  { %p588_p11 = scmp.ne.s32.totalorder %s711_s18, %s587_s10  ;;  %p593_p13 = scmp.lt.s32.totalorder %s587_s10, %s587_s10 }
  0x1d   :  { %p594_p0 = por %p593_p13, %p592_p12 }
  0x1f   :  { %p595_p1 = pnand %p594_p0, %p588_p11 }
  0x21   :  { %598 = shalt.err (!%p595_p1)
}
  0x22   :  { %s675_s1 = smov 128   ;;  %s676_s11 = smov 8  }
  0x23   :  { %24 = dma.hbm_to_vmem [thread:$0]  %s783_s0, 256, %s711_s18, [#allocation3], %s675_s1, %s675_s1, %s676_s11  }
  0x24   :  { %s677_s14 = smov [#allocation7]   ;;  %s599_s19 = scalar_lea.hbm %s785_s2, 2048 }
  0x25   :  { %s40_s15 = sshll.u32 %s677_s14, 4  ;;  %p600_p2 = scmp.ne.s32.totalorder %s785_s2, %s599_s19  ;;  %s41_s15 = int_to_ptr.vmem [resolvable:$true] %s40_s15 }
  0x26   :  { %p603_p3 = scmp.lt.u32.totalorder %s599_s19, %s785_s2 }
  0x28   :  { %p605_p4 = pnand %p603_p3, %p600_p2 }
  0x2a   :  { %608 = shalt.err (!%p605_p4)
}
  0x2b   :  { %s609_s24 = scalar_lea.vmem %s41_s15, 2048  ;;  %p614_p6 = scmp.lt.s32.totalorder %s41_s15, %s41_s15 }
  0x2c   :  { %p610_p5 = scmp.ne.s32.totalorder %s41_s15, %s609_s24  ;;  %p615_p7 = scmp.lt.s32.totalorder %s609_s24, %s609_s24 }
  0x2e   :  { %p616_p8 = por %p615_p7, %p614_p6 }
  0x30   :  { %p617_p9 = pnand %p616_p8, %p610_p5 }
  0x32   :  { %620 = shalt.err (!%p617_p9)
}
  0x33   :  { %s678_s0 = smov 64   ;;  %s679_s18 = smov 4  }
  0x34   :  { %46 = dma.hbm_to_vmem [thread:$0]  %s785_s2, 2048, %s41_s15, [#allocation6], %s678_s0, %s678_s0, %s679_s18  }
  0x35   :  { %s680_s27 = smov [#allocation8]   ;;  %s621_s5 = scalar_lea.hbm %s786_s3, 128 }
  0x36   :  { %s53_s28 = sshll.u32 %s680_s27, 4  ;;  %p622_p10 = scmp.ne.s32.totalorder %s786_s3, %s621_s5  ;;  %s54_s28 = int_to_ptr.vmem [resolvable:$true] %s53_s28 }
  0x37   :  { %p625_p11 = scmp.lt.u32.totalorder %s621_s5, %s786_s3 }
  0x39   :  { %p627_p12 = pnand %p625_p11, %p622_p10 }
  0x3b   :  { %630 = shalt.err (!%p627_p12)
}
  0x3c   :  { %s631_s10 = scalar_lea.vmem %s54_s28, 128  ;;  %p636_p0 = scmp.lt.s32.totalorder %s54_s28, %s54_s28 }
  0x3d   :  { %p632_p13 = scmp.ne.s32.totalorder %s54_s28, %s631_s10  ;;  %p637_p1 = scmp.lt.s32.totalorder %s631_s10, %s631_s10 }
  0x3f   :  { %p638_p2 = por %p637_p1, %p636_p0 }
  0x41   :  { %p639_p3 = pnand %p638_p2, %p632_p13 }
  0x43   :  { %642 = shalt.err (!%p639_p3)
}
  0x44   :  { %56 = dma.hbm_to_vmem [thread:$0]  %s786_s3, 128, %s54_s28, [#allocation9]  }
  0x45   :  { %665 = dma.done.wait [#allocation3], 256  }
  0x46   :  { %666 = vsyncadd [#allocation3], 4294967040 }
  0x47   :  { %667 = dma.done.wait [#allocation6], 2112  }
  0x48   :  { %668 = vsyncadd [#allocation6], 4294965184 }
  0x49   :  { %669 = dma.done.wait [#allocation9], 128  }
  0x4a   :  { %670 = vsyncadd [#allocation9], 4294967168  ;;  %v681_v0 = vmov 0   ;;  %vm87_vm0 = vcmask 1041408   ;;  %v70_v2 = vld [vmem:[#allocation2] sm:$0xff]  ;;  %v71_v3 = vld [vmem:[#allocation2 + $0x8] sm:$0xff] }
  0x4b   :  { %126 = vmatprep.mubr.bf16.mxu0 %v681_v0  ;;  %v468_v1 = vld.sshfl [vmem:[#allocation5] sm:$0x33 pattern:$0x76325410]  ;;  %v534_v6 = vld [vmem:[#allocation7 + $0x40] sm:$0xff]   ;;  %v72_v8 = vpack.c.bf16 %v71_v3, %v70_v2  ;;  %v536_v9 = vld [vmem:[#allocation7 + $0x48] sm:$0xff]  }
  0x4c   :  { %v82_v4 = vcombine.high %v468_v1, %v468_v1  ;;  %v89_v5 = vsel %vm87_vm0, %v468_v1, 0  ;;  %v535_v7 = vld [vmem:[#allocation7] sm:$0xff]   ;;  %499 = vmatprep.subr.bf16.mxu1 %v534_v6  ;;  %vm83_vm1 = vcmask 31744   ;;  %v537_v10 = vld [vmem:[#allocation7 + $0x8] sm:$0xff]   ;;  %v538_v11 = vld [vmem:[#allocation7 + $0x50] sm:$0xff]   ;;  %vm338_vm2 = vcmask 1043456  }
  0x4d   :  { %500 = vmatpush3.bf16.msra.mxu1 %v535_v7  ;;  %v539_v12 = vld [vmem:[#allocation7 + $0x10] sm:$0xff]   ;;  %v540_v13 = vld [vmem:[#allocation7 + $0x58] sm:$0xff]   ;;  %v542_v15 = vld [vmem:[#allocation7 + $0x60] sm:$0xff]   ;;  %v682_v31 = vmov 0.0   ;;  %vm445_vm5 = vcmask 27648   ;;  %s683_s3 = smov [#allocation10]  }
  0x4e   :  { %469 = vmatprep.subr.msk.bf16.mxu0 %vm87_vm0, %v82_v4  ;;  %501 = vmatprep.subr.bf16.mxu1 %v536_v9  ;;  %v541_v14 = vld [vmem:[#allocation7 + $0x18] sm:$0xff]   ;;  %v543_v16 = vld [vmem:[#allocation7 + $0x20] sm:$0xff]   ;;  %v544_v17 = vld [vmem:[#allocation7 + $0x68] sm:$0xff]   ;;  %s454_s11 = sshll.u32 %s683_s3, 4  ;;  %s455_s11 = int_to_ptr.vmem [resolvable:$true] %s454_s11 }
  0x4f   :  { %95 = vmatpush1.bf16.msra.mxu0 %v89_v5  ;;  %v545_v18 = vld [vmem:[#allocation7 + $0x28] sm:$0xff]   ;;  %v546_v19 = vld [vmem:[#allocation7 + $0x70] sm:$0xff]   ;;  %v548_v21 = vld [vmem:[#allocation7 + $0x78] sm:$0xff]   ;;  %s643_s12 = scalar_lea.vmem %s455_s11, 384  ;;  %p648_p5 = scmp.lt.s32.totalorder %s455_s11, %s455_s11 }
  0x50   :  { %v547_v20 = vld [vmem:[#allocation7 + $0x30] sm:$0xff]   ;;  %v549_v22 = vld [vmem:[#allocation7 + $0x38] sm:$0xff]   ;;  %v329_v29 = vld [vmem:[#allocation8] sm:$0xff]  ;;  %p644_p4 = scmp.ne.s32.totalorder %s455_s11, %s643_s12  ;;  %p649_p6 = scmp.lt.s32.totalorder %s643_s12, %s643_s12 }
  0x51   :  { %502 = vmatpush3.bf16.msra.mxu1 %v537_v10  ;;  %v331_v30 = vcombine.high %v329_v29, %v329_v29 }
  0x52   :  { %470 = vmatmul.mubr.msk.bf16.vlgmr.msra.gmra.mrb[0].mxu0 %vm83_vm1, %v72_v8  ;;  %503 = vmatprep.subr.bf16.mxu1 %v538_v11  ;;  %p650_p7 = por %p649_p6, %p648_p5 }
  0x53   :  { %487 = vmatprep.subr.msk.mxu0 %vm338_vm2, %v331_v30  ;;  %407 = vmatprep.mubr.f32.mxu0 %v682_v31 }
  0x54   :  { %488 = vmatpush1.msk.msra.mxu0 %vm338_vm2, %v329_v29  ;;  %p651_p8 = pnand %p650_p7, %p644_p4 }
  0x55   :  { %504 = vmatpush3.bf16.msra.mxu1 %v539_v12 }
  0x56   :  { %505 = vmatprep.subr.bf16.mxu1 %v540_v13 }
  0x59   :  { %506 = vmatpush3.bf16.msra.mxu1 %v541_v14 }
  0x5a   :  { %507 = vmatprep.subr.bf16.mxu1 %v542_v15 }
  0x5d   :  { %508 = vmatpush3.bf16.msra.mxu1 %v543_v16 }
  0x5e   :  { %509 = vmatprep.subr.bf16.mxu1 %v544_v17 }
  0x61   :  { %510 = vmatpush3.bf16.msra.mxu1 %v545_v18 }
  0x62   :  { %511 = vmatprep.subr.bf16.mxu1 %v546_v19 }
  0x65   :  { %512 = vmatpush3.bf16.msra.mxu1 %v547_v20 }
  0x66   :  { %513 = vmatprep.subr.bf16.mxu1 %v548_v21 }
  0x69   :  { %514 = vmatpush3.bf16.msra.mxu1 %v549_v22 }
 0x125   :  { %v128_v23 = vpop.f32.mrb[0].mxu0 }
 0x126   :  { %v130_v24 = vpop.f32.mrb[1].mxu0 }
 0x127   :  { %v132_v25 = vpop.f32.mrb[2].mxu0 }
 0x128   :  { %v137_v26 = vpack.c.bf16 %v132_v25, %v128_v23  ;;  %v134_v27 = vpop.f32.mrb[3].mxu0 }
 0x129   :  { %v138_v28 = vpack.c.bf16 %v134_v27, %v130_v24 }
 0x12b   :  { %299 = vmatprep.mubr.bf16.mxu1 %v138_v28 }
 0x12c   :  { %300 = vmatmul.mubr.bf16.vlgmr.msra.gmra.mrb[0].mxu1 %v137_v26 }
 0x1ff   :  { %v515_v32 = vpop.f32.mrb[0].mxu1 }
 0x200   :  { %v516_v33 = vpop.f32.mrb[1].mxu1 }
 0x201   :  { %v517_v34 = vadd.f32 %v516_v33, %v515_v32  ;;  %v518_v35 = vpop.f32.mrb[2].mxu1 }
 0x202   :  { %v519_v36 = vpop.f32.mrb[3].mxu1 }
 0x203   :  { %vm308_vm3 = vcmp.ge.f32.partialorder %v517_v34, 0.0  ;;  %v310_v37 = vmul.f32 0.2, %v517_v34  ;;  %v520_v38 = vadd.f32 %v519_v36, %v518_v35 }
 0x205   :  { %v312_v39 = vsel %vm308_vm3, %v517_v34, %v310_v37  ;;  %vm309_vm4 = vcmp.ge.f32.partialorder %v520_v38, 0.0  ;;  %v311_v40 = vmul.f32 0.2, %v520_v38 }
 0x206   :  { %v314_v42 = vsel %vm83_vm1, %v312_v39, -inf }
 0x207   :  { %v313_v41 = vsel %vm309_vm4, %v520_v38, %v311_v40 }
 0x208   :  { %v315_v43 = vsel %vm83_vm1, %v313_v41, -inf }
 0x209   :  { %v316_v44 = vmax.f32 %v314_v42, %v315_v43 }
 0x20b   :  { %v317_v45 = vrot.slane %v316_v44, 4 }
 0x20d   :  { %v318_v46 = vmax.f32 %v316_v44, %v317_v45 }
 0x20f   :  { %v319_v47 = vrot.slane %v318_v46, 2 }
 0x211   :  { %v320_v48 = vmax.f32 %v318_v46, %v319_v47 }
 0x213   :  { %v321_v49 = vrot.slane %v320_v48, 1 }
 0x215   :  { %v322_v50 = vmax.f32 %v320_v48, %v321_v49 }
 0x217   :  { %v323_v51 = vsub.f32 %v312_v39, %v322_v50  ;;  %v324_v52 = vsub.f32 %v313_v41, %v322_v50 }
 0x219   :  { %v325_v53 = vmul.f32 1.442695, %v323_v51  ;;  %v327_v54 = vmul.f32 1.442695, %v324_v52 }
 0x21b   :  { %551 = vpow2.f32 %v325_v53 }
 0x21c   :  { %553 = vpow2.f32 %v327_v54 }
 0x225   :  { %v552_v55 = vpop.eup %551 }
 0x226   :  { %v554_v56 = vpop.eup %553  ;;  %489 = vmatmul.mubr.msk.f32.vlgmr.msra.gmra.mrb[4].mxu0 %vm83_vm1, %v552_v55  ;;  %v496_v57 = vpack.c.bf16 %v552_v55, %v552_v55 }
 0x227   :  { %v498_v58 = vpack.c.bf16 %v554_v56, %v554_v56  ;;  %413 = vmatprep.mubr.f32.mxu0 %v682_v31 }
 0x228   :  { %446 = vst.msk [vmem:[#allocation10 + $0x8] sm:$0xf] %vm445_vm5, %v496_v57 }
 0x229   :  { %448 = vst.msk [vmem:[#allocation10 + $0x14] sm:$0xf] %vm445_vm5, %v498_v58 }
 0x22a   :  { %490 = vmatmul.mubr.msk.f32.gmra.mrb[6].mxu0 %vm83_vm1, %v554_v56 }
 0x2f9   :  { %v409_v59 = vpop.f32.mrb[4].mxu0 }
 0x2fa   :  { %v420_v60 = vmul.f32 %v409_v59, %v128_v23  ;;  %v411_v61 = vpop.f32.mrb[5].mxu0 }
 0x2fb   :  { %v421_v62 = vmul.f32 %v411_v61, %v130_v24 }
 0x2fd   :  { %v495_v63 = vpack.c.bf16 %v421_v62, %v420_v60  ;;  %v415_v0 = vpop.f32.mrb[6].mxu0 }
 0x2fe   :  { %v422_v1 = vmul.f32 %v415_v0, %v132_v25  ;;  %v417_v2 = vpop.f32.mrb[7].mxu0 }
 0x2ff   :  { %444 = vst [vmem:[#allocation10] sm:$0xff] %v495_v63  ;;  %v423_v3 = vmul.f32 %v417_v2, %v134_v27 }
 0x301   :  { %v497_v4 = vpack.c.bf16 %v423_v3, %v422_v1 }
 0x303   :  { %447 = vst [vmem:[#allocation10 + $0xc] sm:$0xff] %v497_v4 }
 0x304   :  { %654 = shalt.err (!%p651_p8)
}
 0x305   :  { %s655_s15 = scalar_lea.hbm %s787_s4, 384 }
 0x306   :  { %p656_p9 = scmp.ne.s32.totalorder %s787_s4, %s655_s15  ;;  %p659_p10 = scmp.lt.u32.totalorder %s655_s15, %s787_s4 }
 0x308   :  { %p661_p11 = pnand %p659_p10, %p656_p9 }
 0x30a   :  { %664 = shalt.err (!%p661_p11)
}
 0x30b   :  { %s684_s21 = smov 192   ;;  %s685_s22 = smov 12  }
 0x30c   :  { %460 = dma.vmem_to_hbm [thread:$0]  %s455_s11, 384, %s787_s4, [#allocation4], %s684_s21, %s684_s21, %s685_s22  }
 0x30d   :  { %671 = dma.done.wait [#allocation4], 384  }
 0x30e   :  { %672 = vsyncadd [#allocation4], 4294966912 }
 0x30f   :  { %464 = vsyncpa [#allocation3], 1 }
 0x310   :  { %465 = vsyncpa [#allocation6], 1 }
 0x311   :  { %466 = vsyncpa [#allocation9], 1 }
 0x312   :  { %467 = vsyncpa [#allocation4], 1 }

// kernel: forward.7
= control target key start
LH: loop header
LB: loop body
LE: loop exit
PB: predicated region body
PF: predicated region fallthrough
CT: control target
= control target key end

     0   :  { %9 = vsyncpa [#allocation3], 0  ;;  %s819_s0 = inlined_call_operand.hbm [shape: f32[16,256], index: 0, kind: input, shape index: {}]   ;;  %s820_s1 = inlined_call_operand.hbm [shape: bf16[256,64], index: 1, kind: input, shape index: {}]   ;;  %s821_s2 = inlined_call_operand.hbm [shape: bf16[64,4], index: 2, kind: input, shape index: {}]   ;;  %s822_s3 = inlined_call_operand.hbm [shape: f32[4,64], index: 3, kind: input, shape index: {}]   ;;  %s823_s4 = inlined_call_operand.hbm [shape: bf16[16,68], index: 4, kind: output, shape index: {}]  }
   0x1   :  { %10 = vsyncpa [#allocation6], 0 }
   0x2   :  { %11 = vsyncpa [#allocation9], 0 }
   0x3   :  { %12 = vsyncpa [#allocation4], 0  ;;  %s706_s15 = smov [#allocation5]   ;;  %s588_s19 = scalar_lea.hbm %s820_s1, 2048 }
   0x4   :  { %s30_s16 = sshll.u32 %s706_s15, 4  ;;  %p589_p0 = scmp.ne.s32.totalorder %s820_s1, %s588_s19  ;;  %s31_s16 = int_to_ptr.vmem [resolvable:$true] %s30_s16 }
   0x5   :  { %p592_p1 = scmp.lt.u32.totalorder %s588_s19, %s820_s1 }
   0x7   :  { %p594_p2 = pnand %p592_p1, %p589_p0 }
   0x9   :  { %597 = shalt.err (!%p594_p2)
}
   0xa   :  { %s598_s24 = scalar_lea.vmem %s31_s16, 2048  ;;  %p603_p4 = scmp.lt.s32.totalorder %s31_s16, %s31_s16 }
   0xb   :  { %p599_p3 = scmp.ne.s32.totalorder %s31_s16, %s598_s24  ;;  %p604_p5 = scmp.lt.s32.totalorder %s598_s24, %s598_s24 }
   0xd   :  { %p605_p6 = por %p604_p5, %p603_p4 }
   0xf   :  { %p606_p7 = pnand %p605_p6, %p599_p3 }
  0x11   :  { %609 = shalt.err (!%p606_p7)
}
  0x12   :  { %s707_s25 = smov 64   ;;  %s708_s26 = smov 4  }
  0x13   :  { %36 = dma.hbm_to_vmem [thread:$0]  %s820_s1, 2048, %s31_s16, [#allocation6], %s707_s25, %s707_s25, %s708_s26  }
  0x14   :  { %s709_s29 = smov [#allocation2]   ;;  %s610_s7 = scalar_lea.hbm %s819_s0, 512 }
  0x15   :  { %s18_s30 = sshll.u32 %s709_s29, 4  ;;  %p611_p8 = scmp.ne.s32.totalorder %s819_s0, %s610_s7  ;;  %s19_s30 = int_to_ptr.vmem [resolvable:$true] %s18_s30 }
  0x16   :  { %p614_p9 = scmp.lt.u32.totalorder %s610_s7, %s819_s0 }
  0x18   :  { %p616_p10 = pnand %p614_p9, %p611_p8 }
  0x1a   :  { %619 = shalt.err (!%p616_p10)
}
  0x1b   :  { %s620_s12 = scalar_lea.vmem %s19_s30, 512  ;;  %p625_p12 = scmp.lt.s32.totalorder %s19_s30, %s19_s30 }
  0x1c   :  { %p621_p11 = scmp.ne.s32.totalorder %s19_s30, %s620_s12  ;;  %p626_p13 = scmp.lt.s32.totalorder %s620_s12, %s620_s12 }
  0x1e   :  { %p627_p0 = por %p626_p13, %p625_p12 }
  0x20   :  { %p628_p1 = pnand %p627_p0, %p621_p11 }
  0x22   :  { %631 = shalt.err (!%p628_p1)
}
  0x23   :  { %s710_s1 = smov 256   ;;  %s711_s13 = smov 16  }
  0x24   :  { %24 = dma.hbm_to_vmem [thread:$0]  %s819_s0, 512, %s19_s30, [#allocation3], %s710_s1, %s710_s1, %s711_s13  }
  0x25   :  { %s712_s16 = smov [#allocation7]   ;;  %s713_s18 = smov [#allocation8]  }
  0x26   :  { %s42_s17 = sshll.u32 %s712_s16, 4  ;;  %s55_s19 = sshll.u32 %s713_s18, 4  ;;  %s43_s17 = int_to_ptr.vmem [resolvable:$true] %s42_s17  ;;  %s56_s19 = int_to_ptr.vmem [resolvable:$true] %s55_s19 }
  0x27   :  { %s632_s22 = scalar_lea.hbm %s821_s2, 512 }
  0x28   :  { %p633_p2 = scmp.ne.s32.totalorder %s821_s2, %s632_s22  ;;  %p636_p3 = scmp.lt.u32.totalorder %s632_s22, %s821_s2 }
  0x2a   :  { %p638_p4 = pnand %p636_p3, %p633_p2 }
  0x2c   :  { %641 = shalt.err (!%p638_p4)
}
  0x2d   :  { %s642_s0 = scalar_lea.vmem %s43_s17, 512  ;;  %p647_p6 = scmp.lt.s32.totalorder %s43_s17, %s43_s17 }
  0x2e   :  { %p643_p5 = scmp.ne.s32.totalorder %s43_s17, %s642_s0  ;;  %p648_p7 = scmp.lt.s32.totalorder %s642_s0, %s642_s0 }
  0x30   :  { %p649_p8 = por %p648_p7, %p647_p6 }
  0x32   :  { %p650_p9 = pnand %p649_p8, %p643_p5 }
  0x34   :  { %653 = shalt.err (!%p650_p9)
}
  0x35   :  { %48 = dma.hbm_to_vmem [thread:$0]  %s821_s2, 512, %s43_s17, [#allocation6], %s707_s25, %s707_s25, %s708_s26  }
  0x36   :  { %s654_s7 = scalar_lea.hbm %s822_s3, 64 }
  0x37   :  { %p655_p10 = scmp.ne.s32.totalorder %s822_s3, %s654_s7  ;;  %p658_p11 = scmp.lt.u32.totalorder %s654_s7, %s822_s3 }
  0x39   :  { %p660_p12 = pnand %p658_p11, %p655_p10 }
  0x3b   :  { %663 = shalt.err (!%p660_p12)
}
  0x3c   :  { %s664_s12 = scalar_lea.vmem %s56_s19, 64  ;;  %p669_p0 = scmp.lt.s32.totalorder %s56_s19, %s56_s19 }
  0x3d   :  { %p665_p13 = scmp.ne.s32.totalorder %s56_s19, %s664_s12  ;;  %p670_p1 = scmp.lt.s32.totalorder %s664_s12, %s664_s12 }
  0x3f   :  { %p671_p2 = por %p670_p1, %p669_p0 }
  0x41   :  { %p672_p3 = pnand %p671_p2, %p665_p13 }
  0x43   :  { %675 = shalt.err (!%p672_p3)
}
  0x44   :  { %58 = dma.hbm_to_vmem [thread:$0]  %s822_s3, 64, %s56_s19, [#allocation9]  }
  0x45   :  { %698 = dma.done.wait [#allocation3], 512  }
  0x46   :  { %699 = vsyncadd [#allocation3], 4294966784 }
  0x47   :  { %700 = dma.done.wait [#allocation6], 2560  }
  0x48   :  { %701 = vsyncadd [#allocation6], 4294964736 }
  0x49   :  { %702 = dma.done.wait [#allocation9], 64  }
  0x4a   :  { %703 = vsyncadd [#allocation9], 4294967232  ;;  %v714_v0 = vmov 0.0   ;;  %v564_v1 = vld [vmem:[#allocation5 + $0x40] sm:$0xff]   ;;  %v566_v3 = vld [vmem:[#allocation5 + $0x48] sm:$0xff]   ;;  %vm715_vm0 = vmmov 0  }
  0x4b   :  { %531 = vmatprep.subr.bf16.mxu1 %v714_v0  ;;  %v565_v2 = vld [vmem:[#allocation5] sm:$0xff]   ;;  %501 = vmatprep.subr.bf16.mxu0 %v564_v1  ;;  %v567_v4 = vld [vmem:[#allocation5 + $0x8] sm:$0xff]   ;;  %v568_v5 = vld [vmem:[#allocation5 + $0x50] sm:$0xff]   ;;  %vm280_vm1 = vcmask 523264   ;;  %vm354_vm2 = vcmask 1043456   ;;  %vm331_vm5 = vcmask 31744  }
  0x4c   :  { %502 = vmatpush3.bf16.msra.mxu0 %v565_v2  ;;  %v569_v6 = vld [vmem:[#allocation5 + $0x10] sm:$0xff]   ;;  %v570_v7 = vld [vmem:[#allocation5 + $0x58] sm:$0xff]   ;;  %v572_v9 = vld [vmem:[#allocation5 + $0x60] sm:$0xff]   ;;  %539 = vmatprep.mubr.msk.bf16.mxu1 %vm715_vm0, %v714_v0  ;;  %s716_s3 = smov [#allocation10]   ;;  %vm451_vm6 = vcmask 551936  }
  0x4d   :  { %503 = vmatprep.subr.bf16.mxu0 %v566_v3  ;;  %v571_v8 = vld [vmem:[#allocation5 + $0x18] sm:$0xff]   ;;  %v573_v10 = vld [vmem:[#allocation5 + $0x20] sm:$0xff]   ;;  %v574_v11 = vld [vmem:[#allocation5 + $0x68] sm:$0xff]   ;;  %s459_s13 = sshll.u32 %s716_s3, 4  ;;  %s460_s13 = int_to_ptr.vmem [resolvable:$true] %s459_s13 }
  0x4e   :  { %v73_v12 = vld [vmem:[#allocation2 + $0x8] sm:$0xff]  ;;  %v75_v13 = vld [vmem:[#allocation2 + $0x18] sm:$0xff]  ;;  %v580_v16 = vld [vmem:[#allocation7] sm:$0xff]   ;;  %s676_s14 = scalar_lea.vmem %s460_s13, 128  ;;  %p681_p5 = scmp.lt.s32.totalorder %s460_s13, %s460_s13 }
  0x4f   :  { %v575_v14 = vld [vmem:[#allocation5 + $0x28] sm:$0xff]   ;;  %v77_v15 = vpack.c.bf16 %v75_v13, %v73_v12  ;;  %v576_v17 = vld [vmem:[#allocation5 + $0x70] sm:$0xff]   ;;  %532 = vmatpush3.bf16.msra.mxu1 %v580_v16  ;;  %v578_v20 = vld [vmem:[#allocation5 + $0x78] sm:$0xff]   ;;  %p677_p4 = scmp.ne.s32.totalorder %s460_s13, %s676_s14  ;;  %p682_p6 = scmp.lt.s32.totalorder %s676_s14, %s676_s14 }
  0x50   :  { %504 = vmatpush3.bf16.msra.mxu0 %v567_v4  ;;  %v581_v18 = vld [vmem:[#allocation7 + $0x8] sm:$0xff]   ;;  %533 = vmatprep.subr.bf16.mxu1 %v714_v0  ;;  %v577_v19 = vld [vmem:[#allocation5 + $0x30] sm:$0xff]   ;;  %v579_v21 = vld [vmem:[#allocation5 + $0x38] sm:$0xff]  }
  0x51   :  { %505 = vmatprep.subr.bf16.mxu0 %v568_v5  ;;  %238 = vmatprep.mubr.bf16.mxu0 %v77_v15  ;;  %v72_v22 = vld [vmem:[#allocation2] sm:$0xff]  ;;  %v74_v23 = vld [vmem:[#allocation2 + $0x10] sm:$0xff]  ;;  %v583_v26 = vld [vmem:[#allocation7 + $0x18] sm:$0xff]   ;;  %p683_p7 = por %p682_p6, %p681_p5 }
  0x52   :  { %v76_v24 = vpack.c.bf16 %v74_v23, %v72_v22  ;;  %v582_v25 = vld [vmem:[#allocation7 + $0x10] sm:$0xff]   ;;  %v347_v34 = vld [vmem:[#allocation8] sm:$0xf] }
  0x53   :  { %534 = vmatpush3.bf16.msra.mxu1 %v581_v18  ;;  %p684_p8 = pnand %p683_p7, %p677_p4 }
  0x54   :  { %506 = vmatpush3.bf16.msra.mxu0 %v569_v6  ;;  %535 = vmatprep.subr.bf16.mxu1 %v714_v0 }
  0x55   :  { %507 = vmatprep.subr.bf16.mxu0 %v570_v7 }
  0x57   :  { %536 = vmatpush3.bf16.msra.mxu1 %v582_v25 }
  0x58   :  { %508 = vmatpush3.bf16.msra.mxu0 %v571_v8  ;;  %537 = vmatprep.subr.bf16.mxu1 %v714_v0 }
  0x59   :  { %509 = vmatprep.subr.bf16.mxu0 %v572_v9 }
  0x5b   :  { %538 = vmatpush3.bf16.msra.mxu1 %v583_v26 }
  0x5c   :  { %510 = vmatpush3.bf16.msra.mxu0 %v573_v10  ;;  %543 = vmatprep.subr.msk.mxu1 %vm354_vm2, %v347_v34 }
  0x5d   :  { %511 = vmatprep.subr.bf16.mxu0 %v574_v11 }
  0x60   :  { %512 = vmatpush3.bf16.msra.mxu0 %v575_v14 }
  0x61   :  { %513 = vmatprep.subr.bf16.mxu0 %v576_v17 }
  0x64   :  { %514 = vmatpush3.bf16.msra.mxu0 %v577_v19 }
  0x65   :  { %515 = vmatprep.subr.bf16.mxu0 %v578_v20 }
  0x68   :  { %516 = vmatpush3.bf16.msra.mxu0 %v579_v21 }
  0x6b   :  { %239 = vmatmul.mubr.bf16.vlgmr.msra.gmra.mrb[0].mxu0 %v76_v24 }
 0x13e   :  { %v517_v27 = vpop.f32.mrb[0].mxu0 }
 0x13f   :  { %v518_v28 = vpop.f32.mrb[1].mxu0 }
 0x140   :  { %v519_v29 = vadd.f32 %v518_v28, %v517_v27  ;;  %v520_v30 = vpop.f32.mrb[2].mxu0 }
 0x141   :  { %v521_v31 = vpop.f32.mrb[3].mxu0 }
 0x142   :  { %v522_v32 = vadd.f32 %v521_v31, %v520_v30 }
 0x144   :  { %v247_v33 = vpack.c.bf16 %v522_v32, %v519_v29 }
 0x146   :  { %540 = vmatmul.mubr.msk.bf16.vlgmr.msra.gmra.mrb[0].mxu1 %vm280_vm1, %v247_v33 }
 0x147   :  { %544 = vmatpush3.msk.msra.mxu1 %vm354_vm2, %v347_v34 }
 0x219   :  { %v318_v35 = vpop.f32.mrb[0].mxu1 }
 0x21a   :  { %vm325_vm3 = vcmp.ge.f32.partialorder %v318_v35, 0.0  ;;  %v327_v36 = vmul.f32 0.2, %v318_v35  ;;  %v541_v37 = vpop.f32.mrb[1].mxu1 }
 0x21b   :  { %v321_v38 = vpop.f32.mrb[2].mxu1 }
 0x21c   :  { %v329_v39 = vsel %vm325_vm3, %v318_v35, %v327_v36  ;;  %vm326_vm4 = vcmp.ge.f32.partialorder %v321_v38, 0.0  ;;  %v328_v40 = vmul.f32 0.2, %v321_v38  ;;  %v542_v41 = vpop.f32.mrb[3].mxu1 }
 0x21d   :  { %v332_v43 = vsel %vm331_vm5, %v329_v39, -inf }
 0x21e   :  { %v330_v42 = vsel %vm326_vm4, %v321_v38, %v328_v40 }
 0x21f   :  { %v333_v44 = vsel %vm331_vm5, %v330_v42, -inf }
 0x220   :  { %v334_v45 = vmax.f32 %v332_v43, %v333_v44 }
 0x222   :  { %v335_v46 = vrot.slane %v334_v45, 4 }
 0x224   :  { %v336_v47 = vmax.f32 %v334_v45, %v335_v46 }
 0x226   :  { %v337_v48 = vrot.slane %v336_v47, 2 }
 0x228   :  { %v338_v49 = vmax.f32 %v336_v47, %v337_v48 }
 0x22a   :  { %v339_v50 = vrot.slane %v338_v49, 1 }
 0x22c   :  { %v340_v51 = vmax.f32 %v338_v49, %v339_v50 }
 0x22e   :  { %v341_v52 = vsub.f32 %v329_v39, %v340_v51  ;;  %v342_v53 = vsub.f32 %v330_v42, %v340_v51 }
 0x230   :  { %v343_v54 = vmul.f32 1.442695, %v341_v52  ;;  %v345_v55 = vmul.f32 1.442695, %v342_v53 }
 0x232   :  { %584 = vpow2.f32 %v343_v54 }
 0x233   :  { %586 = vpow2.f32 %v345_v55 }
 0x23c   :  { %v585_v56 = vpop.eup %584 }
 0x23d   :  { %v587_v57 = vpop.eup %586  ;;  %545 = vmatprep.mubr.msk.f32.mxu1 %vm331_vm5, %v585_v56 }
 0x23e   :  { %546 = vmatmul.mubr.msk.f32.vlgmr.msra.gmra.mrb[4].mxu1 %vm331_vm5, %v587_v57  ;;  %v559_v58 = vpack.i.bf16 %v587_v57, %v585_v56 }
 0x240   :  { %560 = vrot.lane.b32.xlu0 %v559_v58, %s707_s25 }
 0x2b2   :  { %v561_v59 = vpop.permute.xlu0 %560 }
 0x2b3   :  { %v563_v61 = vunpack.i.h.bf16 %v561_v59  ;;  %v562_v0 = vunpack.i.l.bf16 %v561_v59 }
 0x311   :  { %v547_v60 = vpop.f32.mrb[4].mxu1 }
 0x312   :  { %v434_v62 = vmul.f32 %v547_v60, %v522_v32  ;;  %v424_v63 = vpop.f32.mrb[5].mxu1 }
 0x313   :  { %v433_v1 = vmul.f32 %v519_v29, %v424_v63 }
 0x314   :  { %v442_v2 = vsel %vm280_vm1, %v434_v62, %v563_v61 }
 0x315   :  { %v500_v3 = vpack.c.bf16 %v442_v2, %v442_v2  ;;  %v441_v4 = vsel %vm280_vm1, %v433_v1, %v562_v0 }
 0x316   :  { %v499_v5 = vpack.c.bf16 %v441_v4, %v441_v4 }
 0x317   :  { %453 = vst.msk [vmem:[#allocation10 + $0x4] sm:$0xf] %vm451_vm6, %v500_v3 }
 0x318   :  { %452 = vst.msk [vmem:[#allocation10] sm:$0xf] %vm451_vm6, %v499_v5 }
 0x319   :  { %687 = shalt.err (!%p684_p8)
}
 0x31a   :  { %s688_s17 = scalar_lea.hbm %s823_s4, 128 }
 0x31b   :  { %p689_p9 = scmp.ne.s32.totalorder %s823_s4, %s688_s17  ;;  %p692_p10 = scmp.lt.u32.totalorder %s688_s17, %s823_s4 }
 0x31d   :  { %p694_p11 = pnand %p692_p10, %p689_p9 }
 0x31f   :  { %697 = shalt.err (!%p694_p11)
}
 0x320   :  { %465 = dma.vmem_to_hbm [thread:$0]  %s460_s13, 128, %s823_s4, [#allocation4], %s707_s25, %s707_s25, %s708_s26  }
 0x321   :  { %704 = dma.done.wait [#allocation4], 128  }
 0x322   :  { %705 = vsyncadd [#allocation4], 4294967168 }
 0x323   :  { %469 = vsyncpa [#allocation3], 1 }
 0x324   :  { %470 = vsyncpa [#allocation6], 1 }
 0x325   :  { %471 = vsyncpa [#allocation9], 1 }
 0x326   :  { %472 = vsyncpa [#allocation4], 1 }

// kernel: forward.8
= control target key start
LH: loop header
LB: loop body
LE: loop exit
PB: predicated region body
PF: predicated region fallthrough
CT: control target
= control target key end

     0   :  { %9 = vsyncpa [#allocation3], 0  ;;  %s1117_s0 = inlined_call_operand.hbm [shape: bf16[16,16], index: 0, kind: input, shape index: {}]   ;;  %s1118_s1 = inlined_call_operand.hbm [shape: bf16[16,68], index: 1, kind: input, shape index: {}]   ;;  %s1119_s2 = inlined_call_operand.hbm [shape: f32[4,64], index: 2, kind: input, shape index: {}]   ;;  %s1120_s3 = inlined_call_operand.hbm [shape: f32[1,64], index: 3, kind: input, shape index: {}]   ;;  %s1121_s4 = inlined_call_operand.hbm [shape: f32[16,64], index: 4, kind: output, shape index: {}]  }
   0x1   :  { %11 = vsyncpa [#allocation3 + $0x1], 0 }
   0x2   :  { %12 = vsyncpa [#allocation6], 0 }
   0x3   :  { %13 = vsyncpa [#allocation9], 0 }
   0x4   :  { %14 = vsyncpa [#allocation4], 0 }
   0x5   :  { %16 = vsyncpa [#allocation4 + $0x1], 0  ;;  %s862_s15 = smov 0   ;;  %s864_s16 = smov 0  }
   0x6   :  { %s866_s17 = smov 0   ;;  %s868_s18 = smov 0  }
   0x7 LB: > { %s883_s19 = sadd.s32 4294967295, %s825_s18   ;;  %s514_s20 = sadd.s32 4294967294, %s825_s18   ;;  %s825_s18 = sphi %s868_s18, %s1144_s18   ;;  %s821_s17 = sphi %s866_s17, %s1143_s17   ;;  %s817_s16 = sphi %s864_s16, %s1142_s16   ;;  %s813_s15 = sphi %s862_s15, %s1141_s15  }
   0x8   : > { %p42_p0 = scmp.ne.s32.totalorder %s817_s16, %s813_s15  ;;  %p1122_p1 = scmp.eq.s32.totalorder %s883_s19, 0 }
   0x9   : > { %p135_p3 = scmp.eq.s32.totalorder %s514_s20, 1  ;;  %p515_p5 = scmp.ge.s32.totalorder %s825_s18, 1 }
   0xa   : > { %p892_p4 = por %p1122_p1, %p42_p0  ;;  %p142_p7 = scmp.lt.s32.totalorder %s825_s18, 3 }
   0xb   : > { %p897_p6 = por %p135_p3, %p42_p0  ;;  %s827_s24 = smov [#allocation5]  }
   0xc   : > { %s1125_s21 = scalar_select %p892_p4, 1, 0 }
   0xd   : > { %s1126_s22 = scalar_select %p897_p6, 1, 0 }
   0xe   : > { %p902_p8 = pnand %p515_p5, %p142_p7  ;;  %s154_s25 = sshll.u32 %s827_s24, 4  ;;  %s906_s25 = int_to_ptr.vmem [resolvable:$true] %s154_s25 }
   0xf   : > { %s828_s27 = smov [#allocation7]   ;;  %s829_s29 = smov [#allocation8]  }
  0x10   : > { %s1127_s23 = scalar_select %p902_p8, 1, 0 }
  0x11   : > { %p568_p9 = pneg %p902_p8  ;;  %s168_s28 = sshll.u32 %s828_s27, 4  ;;  %s917_s28 = int_to_ptr.vmem [resolvable:$true] %s168_s28 }
  0x12   : > { %s919_s30 = sshll.u32 %s829_s29, 4  ;;  %s637_s7 = scalar_lea.hbm %s1118_s1, 128  ;;  %s180_s30 = int_to_ptr.vmem [resolvable:$true] %s919_s30 }
  0x13   : > { %p913_p11 = pnand %p568_p9, %p1122_p1  ;;  %p638_p12 = scmp.ne.s32.totalorder %s1118_s1, %s637_s7 }
  0x14   : > { %p644_p5 = scmp.lt.u32.totalorder %s637_s7, %s1118_s1 }
  0x15   : > { %p929_p13 = pneg %p913_p11 }
  0x17   : > { %p640_p0 = pnand %p929_p13, %p638_p12 }
  0x19   : > { %p641_p3 = pneg %p640_p0 }
  0x1b   : > { %p646_p7 = pnand %p644_p5, %p641_p3 }
  0x1d   : > { %649 = shalt.err (!%p646_p7)
}
  0x1e   : > { %s650_s13 = scalar_lea.vmem %s906_s25, 128  ;;  %p658_p2 = scmp.lt.s32.totalorder %s906_s25, %s906_s25 }
  0x1f   : > { %p651_p9 = scmp.ne.s32.totalorder %s906_s25, %s650_s13  ;;  %p659_p6 = scmp.lt.s32.totalorder %s650_s13, %s650_s13 }
  0x21   : > { %p653_p10 = pnand %p651_p9, %p929_p13  ;;  %p660_p12 = por %p659_p6, %p658_p2 }
  0x23   : > { %p654_p1 = pneg %p653_p10 }
  0x25   : > { %p661_p0 = pnand %p660_p12, %p654_p1 }
  0x27   : > { %664 = shalt.err (!%p661_p0)
}
  0x28   : > { %s830_s14 = smov 64   ;;  %s831_s20 = smov 4  }
  0x29   : > { %571 = dma.hbm_to_vmem [thread:$0]  (!%p913_p11), %s1118_s1, 128, %s906_s25, [#allocation6], %s830_s14, %s830_s14, %s831_s20  }
  0x2a   : > { %s665_s6 = scalar_lea.hbm %s1119_s2, 64 }
  0x2b   : > { %p666_p2 = scmp.ne.s32.totalorder %s1119_s2, %s665_s6  ;;  %p672_p10 = scmp.lt.u32.totalorder %s665_s6, %s1119_s2 }
  0x2d   : > { %p668_p1 = pnand %p666_p2, %p929_p13 }
  0x2f   : > { %p669_p6 = pneg %p668_p1 }
  0x31   : > { %p674_p3 = pnand %p672_p10, %p669_p6 }
  0x33   : > { %677 = shalt.err (!%p674_p3)
}
  0x34   : > { %s678_s25 = scalar_lea.vmem %s917_s28, 64  ;;  %p686_p12 = scmp.lt.s32.totalorder %s917_s28, %s917_s28 }
  0x35   : > { %p679_p5 = scmp.ne.s32.totalorder %s917_s28, %s678_s25  ;;  %p687_p0 = scmp.lt.s32.totalorder %s678_s25, %s678_s25 }
  0x37   : > { %p681_p7 = pnand %p679_p5, %p929_p13  ;;  %p688_p2 = por %p687_p0, %p686_p12 }
  0x39   : > { %p682_p9 = pneg %p681_p7 }
  0x3b   : > { %p689_p1 = pnand %p688_p2, %p682_p9 }
  0x3d   : > { %692 = shalt.err (!%p689_p1)
}
  0x3e   : > { %574 = dma.hbm_to_vmem [thread:$0]  (!%p913_p11), %s1119_s2, 64, %s917_s28, [#allocation6]  }
  0x3f   : > { %s693_s24 = scalar_lea.hbm %s1120_s3, 16 }
  0x40   : > { %p694_p6 = scmp.ne.s32.totalorder %s1120_s3, %s693_s24  ;;  %p700_p5 = scmp.lt.u32.totalorder %s693_s24, %s1120_s3 }
  0x42   : > { %p696_p10 = pnand %p694_p6, %p929_p13 }
  0x44   : > { %p697_p3 = pneg %p696_p10 }
  0x46   : > { %p702_p7 = pnand %p700_p5, %p697_p3 }
  0x48   : > { %705 = shalt.err (!%p702_p7)
}
  0x49   : > { %s706_s7 = scalar_lea.vmem %s180_s30, 16  ;;  %s713_s28 = scalar_lea.vmem %s180_s30, 32 }
  0x4a   : > { %p707_p9 = scmp.ne.s32.totalorder %s180_s30, %s706_s7  ;;  %p714_p2 = scmp.lt.s32.totalorder %s180_s30, %s180_s30 }
  0x4b   : > { %p715_p1 = scmp.lt.s32.totalorder %s713_s28, %s706_s7 }
  0x4c   : > { %p709_p12 = pnand %p707_p9, %p929_p13 }
  0x4d   : > { %p716_p4 = por %p715_p1, %p714_p2 }
  0x4e   : > { %p710_p0 = pneg %p709_p12 }
  0x50   : > { %p717_p8 = pnand %p716_p4, %p710_p0 }
  0x52   : > { %720 = shalt.err (!%p717_p8)
}
  0x53   : > { %577 = dma.hbm_to_vmem [thread:$0]  (!%p913_p11), %s1120_s3, 16, %s180_s30, [#allocation9]  }
  0x54   : > { %s993_s10 = sadd.s32 1, %s825_s18   ;;  %s29_s26 = sadd.s32 1, %s821_s17 }
  0x55   : > { %s26_s11 = ssub.s32 %s825_s18, %s993_s10  ;;  %p36_p8 = scmp.ne.s32.totalorder %s821_s17, %s817_s16 }
  0x56   : > { %p27_p4 = scmp.eq.s32.totalorder %s26_s11, 0  ;;  %p37_p13 = scmp.eq.s32.totalorder %s825_s18, 0 }
  0x57   : > { %p589_p6 = scmp.lt.s32.totalorder %s825_s18, 2  ;;  %p1130_p3 = scmp.eq.s32.totalorder %s883_s19, 1 }
  0x58   : > { %s1003_s25 = scalar_select %p27_p4, %s821_s17, %s29_s26  }
  0x59   : > { %p38_p10 = por %p37_p13, %p36_p8  ;;  %p1007_p5 = por %p1130_p3, %p36_p8 }
  0x5a   : > { %s190_s13 = sand.u32 1, %s821_s17   ;;  %s521_s14 = sshll.u32 %s825_s18, 6 }
  0x5b   : > { %s520_s30 = sshll.u32 %s190_s13, 2  ;;  %s1016_s27 = scalar_lea.hbm %s1117_s0, %s521_s14 }
  0x5c   : > { %s194_s29 = scalar_lea.vmem [#allocation2], %s520_s30  ;;  %p1018_p11 = pnand %p589_p6, %p38_p10 }
  0x5d   : > { %s201_s5 = sshll.u32 %s194_s29, 4  ;;  %s191_s7 = scalar_lea.sflag [#allocation3], %s190_s13  ;;  %s1022_s5 = int_to_ptr.vmem [resolvable:$true] %s201_s5 }
  0x5e   : > { %s721_s28 = scalar_lea.hbm %s1016_s27, 64  ;;  %p723_p9 = pneg %p1018_p11 }
  0x5f   : > { %p722_p7 = scmp.ne.s32.totalorder %s1016_s27, %s721_s28  ;;  %s726_s11 = scalar_lea.hbm %s1117_s0, 128 }
  0x60   : > { %p727_p2 = scmp.lt.u32.totalorder %s1016_s27, %s1117_s0  ;;  %p728_p1 = scmp.lt.u32.totalorder %s726_s11, %s721_s28 }
  0x61   : > { %p724_p12 = pnand %p723_p9, %p722_p7  ;;  %p730_p8 = scmp.lt.u32.totalorder %s721_s28, %s1016_s27 }
  0x62   : > { %p729_p4 = por %p728_p1, %p727_p2 }
  0x63   : > { %p725_p0 = pneg %p724_p12 }
  0x64   : > { %p731_p13 = por %p730_p8, %p729_p4 }
  0x66   : > { %p732_p6 = pnand %p731_p13, %p725_p0 }
  0x68   : > { %735 = shalt.err (!%p732_p6)
}
  0x69   : > { %s736_s13 = scalar_lea.vmem %s1022_s5, 64  ;;  %s832_s30 = smov [#allocation2]  }
  0x6a   : > { %p737_p10 = scmp.ne.s32.totalorder %s1022_s5, %s736_s13  ;;  %s741_s20 = sshll.u32 %s832_s30, 4  ;;  %s742_s20 = int_to_ptr.vmem [resolvable:$false] %s741_s20 }
  0x6b   : > { %s743_s24 = scalar_lea.vmem %s742_s20, 128  ;;  %p744_p12 = scmp.lt.s32.totalorder %s1022_s5, %s742_s20 }
  0x6c   : > { %p739_p3 = pnand %p737_p10, %p723_p9  ;;  %p745_p2 = scmp.lt.s32.totalorder %s743_s24, %s736_s13 }
  0x6e   : > { %p740_p7 = pneg %p739_p3  ;;  %p746_p1 = por %p745_p2, %p744_p12 }
  0x70   : > { %p747_p4 = pnand %p746_p1, %p740_p7 }
  0x72   : > { %750 = shalt.err (!%p747_p4)
}
  0x73   : > { %581 = dma.hbm_to_vmem [thread:$0]  (!%p1018_p11), %s1016_s27, 64, %s1022_s5, %s191_s7  }
  0x74   : > { %p1133_p0 = scmp.ne.s32.totalorder %s1127_s23, 0 }
  0x75   : > { %s1052_s29 = sand.u32 (!%p1133_p0), 1, %s817_s16   ;;  %p1134_p9 = scmp.ne.s32.totalorder (!%p1133_p0), %s1125_s21, 0 }
  0x76   : > { %210 = sbr.rel (%p1133_p0) target bundleno = 708 (0x2c4), region = 36  ;;  %s523_s28 = sshll.u32 (!%p1133_p0), %s1052_s29, 2 }
  0x77   : > { %s213_s8 = scalar_lea.sflag (!%p1133_p0), [#allocation3], %s1052_s29  ;;  %s216_s9 = scalar_lea.vmem (!%p1133_p0), [#allocation2], %s523_s28 }
  0x7d   : > { %796 = dma.done.wait (%p1134_p9), %s213_s8, 64  }
  0x7e   : > { %798 = vsyncadd (%p1134_p9), %s213_s8, 4294967232  ;;  %p1135_p8 = scmp.eq.s32.totalorder %s883_s19, 0 }
  0x80   : > { %800 = dma.done.wait (%p1135_p8), [#allocation6], 192   ;;  %p1136_p11 = pmov %p1135_p8 }
  0x81   : > { %p1137_p13 = pmov %p1135_p8 }
  0x82   : > { %802 = vsyncadd (%p1136_p11), [#allocation6], 4294967104 }
  0x83   : > { %804 = dma.done.wait (%p1137_p13), [#allocation9], 16   ;;  %p1138_p6 = pmov %p1135_p8 }
  0x84   : > { %v833_v0 = vmov 0.0   ;;  %vm834_vm0 = vmmov 0   ;;  %v634_v1 = vld [vmem:[#allocation5] sm:$0xff]   ;;  %v254_v2 = vld [vmem:[%s216_s9] sm:$0xf]  ;;  %vm263_vm1 = vcmask 130048  }
  0x85   : > { %806 = vsyncadd (%p1138_p6), [#allocation9], 4294967280  ;;  %541 = vmatprep.subr.bf16.mxu0 %v833_v0  ;;  %543 = vmatprep.mubr.msk.bf16.mxu0 %vm834_vm0, %v833_v0  ;;  %v308_v3 = vld [vmem:[#allocation7] sm:$0xf]  ;;  %vm315_vm2 = vcmask 1043456   ;;  %s835_s21 = smov 64  }
  0x86   : > { %547 = vmatprep.subr.mxu1 %v833_v0  ;;  %549 = vmatprep.mubr.msk.f32.mxu1 %vm834_vm0, %v833_v0  ;;  %vm312_vm3 = vcmask 31744   ;;  %s527_s23 = sshll.u32 %s1052_s29, 3  ;;  %v532_v11 = vld [vmem:[#allocation8] ss:$0 sm:$0xff]  ;;  %s534_s27 = sshll.u32 %s883_s19, 7  ;;  %vm399_vm4 = vcmask 523264  }
  0x87   : > { %542 = vmatpush3.bf16.msra.mxu0 %v634_v1  ;;  %548 = vmatpush3.msk.msra.mxu1 %vm315_vm2, %v308_v3  ;;  %s252_s5 = scalar_lea.vmem [#allocation10], %s527_s23  ;;  %s1073_s26 = scalar_lea.hbm %s1121_s4, %s534_s27 }
  0x88   : > { %s415_s6 = sshll.u32 %s252_s5, 4  ;;  %s402_s14 = scalar_lea.sflag [#allocation4], %s1052_s29  ;;  %s1075_s6 = int_to_ptr.vmem [resolvable:$true] %s415_s6 }
  0x89   : > { %s751_s13 = scalar_lea.vmem %s1075_s6, 128  ;;  %s836_s19 = smov [#allocation10]  }
  0x8a   : > { %544 = vmatmul.mubr.msk.bf16.vlgmr.msra.gmra.mrb[0].mxu0 %vm263_vm1, %v254_v2  ;;  %p752_p10 = scmp.ne.s32.totalorder %s1075_s6, %s751_s13  ;;  %s755_s30 = sshll.u32 %s836_s19, 4  ;;  %s756_s30 = int_to_ptr.vmem [resolvable:$false] %s755_s30 }
  0x8b   : > { %s757_s20 = scalar_lea.vmem %s756_s30, 256  ;;  %p758_p12 = scmp.lt.s32.totalorder %s1075_s6, %s756_s30 }
  0x8c   : > { %p753_p3 = pnand %p752_p10, %p1007_p5  ;;  %p759_p2 = scmp.lt.s32.totalorder %s757_s20, %s751_s13 }
  0x8e   : > { %p754_p7 = pneg %p753_p3  ;;  %p760_p1 = por %p759_p2, %p758_p12 }
  0x90   : > { %p761_p4 = pnand %p760_p1, %p754_p7 }
 0x15d   : > { %v301_v4 = vpop.f32.mrb[0].mxu0 }
 0x15e   : > { %635 = vrcp.f32 %v301_v4  ;;  %v545_v5 = vpop.f32.mrb[1].mxu0 }
 0x15f   : > { %v304_v6 = vpop.f32.mrb[2].mxu0 }
 0x160   : > { %v546_v7 = vpop.f32.mrb[3].mxu0 }
 0x168   : > { %v636_v8 = vpop.eup %635 }
 0x169   : > { %310 = vrot.lane.b32.xlu0 %v636_v8, %s835_s21 }
 0x1db   : > { %v311_v9 = vpop.permute.xlu0 %310 }
 0x1dc   : > { %550 = vmatmul.mubr.msk.f32.vlgmr.msra.gmra.mrb[0].mxu1 %vm312_vm3, %v311_v9 }
 0x2af   : > { %v385_v10 = vpop.f32.mrb[0].mxu1 }
 0x2b0   : > { %v389_v12 = vmul.f32 %v385_v10, %v301_v4  ;;  %v551_v13 = vpop.f32.mrb[1].mxu1 }
 0x2b2   : > { %v397_v14 = vadd.f32 %v532_v11, %v389_v12 }
 0x2b4   : > { %v398_v15 = vmax.f32 %v397_v14, 0.0 }
 0x2b6   : > { %400 = vst.msk [vmem:[%s252_s5] sm:$0xff] %vm399_vm4, %v398_v15 }
 0x2b7   : > { %764 = shalt.err (!%p761_p4)
}
 0x2b8   : > { %s765_s24 = scalar_lea.hbm %s1073_s26, 128  ;;  %s769_s8 = scalar_lea.hbm %s1121_s4, 256 }
 0x2b9   : > { %p766_p0 = scmp.ne.s32.totalorder %s1073_s26, %s765_s24  ;;  %p770_p11 = scmp.lt.u32.totalorder %s1073_s26, %s1121_s4 }
 0x2ba   : > { %p771_p13 = scmp.lt.u32.totalorder %s769_s8, %s765_s24  ;;  %p773_p10 = scmp.lt.u32.totalorder %s765_s24, %s1073_s26 }
 0x2bb   : > { %p767_p9 = pnand %p766_p0, %p1007_p5 }
 0x2bc   : > { %p772_p6 = por %p771_p13, %p770_p11 }
 0x2bd   : > { %p768_p8 = pneg %p767_p9 }
 0x2be   : > { %p774_p3 = por %p773_p10, %p772_p6 }
 0x2c0   : > { %p775_p7 = pnand %p774_p3, %p768_p8 }
 0x2c2   : > { %778 = shalt.err (!%p775_p7)
}
 0x2c3   : > { %566 = dma.vmem_to_hbm [thread:$0]  (%p1007_p5), %s1075_s6, 128, %s1073_s26, %s402_s14  }
 0x2c4 PF: > { %s427_s23 = sand.u32 1, %s813_s15   ;;  %p1139_p12 = scmp.ne.s32.totalorder %s1126_s22, 0 }
 0x2c5   : > { %p1140_p2 = scmp.ge.s32.totalorder %s825_s18, 2  ;;  %s428_s27 = scalar_lea.sflag [#allocation4], %s427_s23 }
 0x2c7   : > { %p583_p1 = pnand %p1140_p2, %p1139_p12 }
 0x2c9   : > { %808 = dma.done.wait (!%p583_p1), %s428_s27, 128  }
 0x2ca   : > { %810 = vsyncadd (!%p583_p1), %s428_s27, 4294967168  ;;  %p19_p4 = scmp.ge.s32.totalorder %s993_s10, 4   ;;  %s1141_s15 = smov %s817_s16 }
 0x2cb   : > { %s1142_s16 = smov %s821_s17  ;;  %s1143_s17 = smov %s1003_s25 }
 0x2cc   : > { %s1144_s18 = smov %s993_s10  ;;  %21 = sbr.rel (!%p19_p4) target bundleno = 7 (0x7), region = 93 }
 0x2d3   :  { %433 = vsyncpa [#allocation3], 1 }
 0x2d4   :  { %435 = vsyncpa [#allocation3 + $0x1], 1 }
 0x2d5   :  { %436 = vsyncpa [#allocation6], 1 }
 0x2d6   :  { %437 = vsyncpa [#allocation9], 1 }
 0x2d7   :  { %438 = vsyncpa [#allocation4], 1 }
 0x2d8   :  { %440 = vsyncpa [#allocation4 + $0x1], 1 }

// kernel: forward.9
= control target key start
LH: loop header
LB: loop body
LE: loop exit
PB: predicated region body
PF: predicated region fallthrough
CT: control target
= control target key end

     0   :  { %9 = vsyncpa [#allocation3], 0  ;;  %s482_s0 = inlined_call_operand.hbm [shape: bf16[2,16], index: 0, kind: input, shape index: {}]   ;;  %s483_s1 = inlined_call_operand.hbm [shape: f32[16,64], index: 1, kind: input, shape index: {}]   ;;  %s484_s2 = inlined_call_operand.hbm [shape: bf16[64,3], index: 2, kind: input, shape index: {}]   ;;  %s485_s3 = inlined_call_operand.hbm [shape: f32[1,3], index: 3, kind: input, shape index: {}]   ;;  %s486_s4 = inlined_call_operand.hbm [shape: f32[2,3], index: 4, kind: output, shape index: {}]  }
   0x1   :  { %10 = vsyncpa [#allocation6], 0 }
   0x2   :  { %11 = vsyncpa [#allocation9], 0 }
   0x3   :  { %12 = vsyncpa [#allocation4], 0  ;;  %s386_s15 = smov [#allocation5]   ;;  %s268_s19 = scalar_lea.hbm %s483_s1, 256 }
   0x4   :  { %s28_s16 = sshll.u32 %s386_s15, 4  ;;  %p269_p0 = scmp.ne.s32.totalorder %s483_s1, %s268_s19  ;;  %s29_s16 = int_to_ptr.vmem [resolvable:$true] %s28_s16 }
   0x5   :  { %p272_p1 = scmp.lt.u32.totalorder %s268_s19, %s483_s1 }
   0x7   :  { %p274_p2 = pnand %p272_p1, %p269_p0 }
   0x9   :  { %277 = shalt.err (!%p274_p2)
}
   0xa   :  { %s278_s24 = scalar_lea.vmem %s29_s16, 256  ;;  %p283_p4 = scmp.lt.s32.totalorder %s29_s16, %s29_s16 }
   0xb   :  { %p279_p3 = scmp.ne.s32.totalorder %s29_s16, %s278_s24  ;;  %p284_p5 = scmp.lt.s32.totalorder %s278_s24, %s278_s24 }
   0xd   :  { %p285_p6 = por %p284_p5, %p283_p4 }
   0xf   :  { %p286_p7 = pnand %p285_p6, %p279_p3 }
  0x11   :  { %289 = shalt.err (!%p286_p7)
}
  0x12   :  { %s387_s25 = smov 128   ;;  %s388_s26 = smov 8  }
  0x13   :  { %34 = dma.hbm_to_vmem [thread:$0]  %s483_s1, 256, %s29_s16, [#allocation6], %s387_s25, %s387_s25, %s388_s26  }
  0x14   :  { %s389_s29 = smov [#allocation2]   ;;  %s390_s5 = smov [#allocation7]  }
  0x15   :  { %s19_s30 = sshll.u32 %s389_s29, 4  ;;  %s40_s6 = sshll.u32 %s390_s5, 4  ;;  %s20_s30 = int_to_ptr.vmem [resolvable:$true] %s19_s30  ;;  %s41_s6 = int_to_ptr.vmem [resolvable:$true] %s40_s6 }
  0x16   :  { %s290_s9 = scalar_lea.hbm %s482_s0, 16 }
  0x17   :  { %p291_p8 = scmp.ne.s32.totalorder %s482_s0, %s290_s9  ;;  %p294_p9 = scmp.lt.u32.totalorder %s290_s9, %s482_s0 }
  0x19   :  { %p296_p10 = pnand %p294_p9, %p291_p8 }
  0x1b   :  { %299 = shalt.err (!%p296_p10)
}
  0x1c   :  { %s300_s1 = scalar_lea.vmem %s20_s30, 16  ;;  %s304_s14 = scalar_lea.vmem %s20_s30, 32 }
  0x1d   :  { %p301_p11 = scmp.ne.s32.totalorder %s20_s30, %s300_s1  ;;  %p305_p12 = scmp.lt.s32.totalorder %s20_s30, %s20_s30 }
  0x1e   :  { %p306_p13 = scmp.lt.s32.totalorder %s304_s14, %s300_s1 }
  0x20   :  { %p307_p0 = por %p306_p13, %p305_p12 }
  0x22   :  { %p308_p1 = pnand %p307_p0, %p301_p11 }
  0x24   :  { %311 = shalt.err (!%p308_p1)
}
  0x25   :  { %22 = dma.hbm_to_vmem [thread:$0]  %s482_s0, 16, %s20_s30, [#allocation3]  }
  0x26   :  { %s312_s19 = scalar_lea.hbm %s484_s2, 512 }
  0x27   :  { %p313_p2 = scmp.ne.s32.totalorder %s484_s2, %s312_s19  ;;  %p316_p3 = scmp.lt.u32.totalorder %s312_s19, %s484_s2 }
  0x29   :  { %p318_p4 = pnand %p316_p3, %p313_p2 }
  0x2b   :  { %321 = shalt.err (!%p318_p4)
}
  0x2c   :  { %s322_s24 = scalar_lea.vmem %s41_s6, 512  ;;  %p327_p6 = scmp.lt.s32.totalorder %s41_s6, %s41_s6 }
  0x2d   :  { %p323_p5 = scmp.ne.s32.totalorder %s41_s6, %s322_s24  ;;  %p328_p7 = scmp.lt.s32.totalorder %s322_s24, %s322_s24 }
  0x2f   :  { %p329_p8 = por %p328_p7, %p327_p6 }
  0x31   :  { %p330_p9 = pnand %p329_p8, %p323_p5 }
  0x33   :  { %333 = shalt.err (!%p330_p9)
}
  0x34   :  { %s391_s0 = smov 64   ;;  %s392_s25 = smov 4  }
  0x35   :  { %46 = dma.hbm_to_vmem [thread:$0]  %s484_s2, 512, %s41_s6, [#allocation6], %s391_s0, %s391_s0, %s392_s25  }
  0x36   :  { %s393_s28 = smov [#allocation8]   ;;  %s334_s7 = scalar_lea.hbm %s485_s3, 16 }
  0x37   :  { %s53_s29 = sshll.u32 %s393_s28, 4  ;;  %p335_p10 = scmp.ne.s32.totalorder %s485_s3, %s334_s7  ;;  %s54_s29 = int_to_ptr.vmem [resolvable:$true] %s53_s29 }
  0x38   :  { %p338_p11 = scmp.lt.u32.totalorder %s334_s7, %s485_s3 }
  0x3a   :  { %p340_p12 = pnand %p338_p11, %p335_p10 }
  0x3c   :  { %343 = shalt.err (!%p340_p12)
}
  0x3d   :  { %s344_s12 = scalar_lea.vmem %s54_s29, 16  ;;  %s348_s2 = scalar_lea.vmem %s54_s29, 32 }
  0x3e   :  { %p345_p13 = scmp.ne.s32.totalorder %s54_s29, %s344_s12  ;;  %p349_p0 = scmp.lt.s32.totalorder %s54_s29, %s54_s29 }
  0x3f   :  { %p350_p1 = scmp.lt.s32.totalorder %s348_s2, %s344_s12 }
  0x41   :  { %p351_p2 = por %p350_p1, %p349_p0 }
  0x43   :  { %p352_p3 = pnand %p351_p2, %p345_p13 }
  0x45   :  { %355 = shalt.err (!%p352_p3)
}
  0x46   :  { %56 = dma.hbm_to_vmem [thread:$0]  %s485_s3, 16, %s54_s29, [#allocation9]  }
  0x47   :  { %378 = dma.done.wait [#allocation3], 16  }
  0x48   :  { %379 = vsyncadd [#allocation3], 4294967280 }
  0x49   :  { %380 = dma.done.wait [#allocation6], 768  }
  0x4a   :  { %381 = vsyncadd [#allocation6], 4294966528 }
  0x4b   :  { %382 = dma.done.wait [#allocation9], 16  }
  0x4c   :  { %383 = vsyncadd [#allocation9], 4294967280  ;;  %v394_v0 = vmov 0.0   ;;  %vm395_vm0 = vmmov 0   ;;  %v71_v1 = vld [vmem:[#allocation5] sm:$0xff]  ;;  %v72_v2 = vld [vmem:[#allocation5 + $0x8] sm:$0xff] }
  0x4d   :  { %235 = vmatprep.subr.bf16.mxu0 %v394_v0  ;;  %237 = vmatprep.mubr.msk.bf16.mxu0 %vm395_vm0, %v394_v0  ;;  %v73_v3 = vpack.c.bf16 %v72_v2, %v71_v1  ;;  %v264_v4 = vld [vmem:[#allocation7] sm:$0xff]   ;;  %v70_v5 = vld [vmem:[#allocation2] sm:$0x1]  ;;  %vm74_vm1 = vcmask 130048   ;;  %v266_v7 = vld [vmem:[#allocation7 + $0x10] sm:$0xff]   ;;  %vm158_vm2 = vcmask 523264  }
  0x4e   :  { %241 = vmatprep.subr.bf16.mxu1 %v394_v0  ;;  %249 = vmatprep.mubr.msk.bf16.mxu1 %vm395_vm0, %v394_v0  ;;  %v265_v6 = vld [vmem:[#allocation7 + $0x8] sm:$0xff]   ;;  %v267_v8 = vld [vmem:[#allocation7 + $0x18] sm:$0xff]   ;;  %v222_v14 = vld [vmem:[#allocation8] ss:$0 sm:$0xff]  ;;  %s396_s3 = smov [#allocation10]   ;;  %vm202_vm3 = vcmask 17408  }
  0x4f   :  { %236 = vmatpush3.bf16.msra.mxu0 %v73_v3  ;;  %242 = vmatpush3.bf16.msra.mxu1 %v264_v4  ;;  %s210_s1 = sshll.u32 %s396_s3, 4  ;;  %s211_s1 = int_to_ptr.vmem [resolvable:$true] %s210_s1 }
  0x50   :  { %243 = vmatprep.subr.bf16.mxu1 %v394_v0  ;;  %s356_s14 = scalar_lea.vmem %s211_s1, 32  ;;  %p361_p5 = scmp.lt.s32.totalorder %s211_s1, %s211_s1 }
  0x51   :  { %p357_p4 = scmp.ne.s32.totalorder %s211_s1, %s356_s14  ;;  %p362_p6 = scmp.lt.s32.totalorder %s356_s14, %s356_s14 }
  0x52   :  { %238 = vmatmul.mubr.msk.bf16.vlgmr.msra.gmra.mrb[0].mxu0 %vm74_vm1, %v70_v5 }
  0x53   :  { %244 = vmatpush3.bf16.msra.mxu1 %v265_v6  ;;  %p363_p7 = por %p362_p6, %p361_p5 }
  0x54   :  { %245 = vmatprep.subr.bf16.mxu1 %v394_v0 }
  0x55   :  { %p364_p8 = pnand %p363_p7, %p357_p4 }
  0x57   :  { %246 = vmatpush3.bf16.msra.mxu1 %v266_v7 }
  0x58   :  { %247 = vmatprep.subr.bf16.mxu1 %v394_v0 }
  0x5b   :  { %248 = vmatpush3.bf16.msra.mxu1 %v267_v8 }
 0x125   :  { %v112_v9 = vpop.f32.mrb[0].mxu0 }
 0x126   :  { %v118_v10 = vpack.c.bf16 %v112_v9, %v112_v9  ;;  %v239_v11 = vpop.f32.mrb[1].mxu0 }
 0x127   :  { %v115_v12 = vpop.f32.mrb[2].mxu0 }
 0x128   :  { %v240_v13 = vpop.f32.mrb[3].mxu0  ;;  %250 = vmatmul.mubr.msk.bf16.vlgmr.msra.gmra.mrb[0].mxu1 %vm158_vm2, %v118_v10 }
 0x1fb   :  { %v196_v15 = vpop.f32.mrb[0].mxu1 }
 0x1fc   :  { %v197_v16 = vadd.f32 %v222_v14, %v196_v15  ;;  %v251_v17 = vpop.f32.mrb[1].mxu1 }
 0x1fd   :  { %v199_v18 = vpop.f32.mrb[2].mxu1 }
 0x1fe   :  { %v252_v19 = vpop.f32.mrb[3].mxu1  ;;  %203 = vst.msk [vmem:[#allocation10] sm:$0x3] %vm202_vm3, %v197_v16 }
 0x1ff   :  { %367 = shalt.err (!%p364_p8)
}
 0x200   :  { %s368_s17 = scalar_lea.hbm %s486_s4, 32 }
 0x201   :  { %p369_p9 = scmp.ne.s32.totalorder %s486_s4, %s368_s17  ;;  %p372_p10 = scmp.lt.u32.totalorder %s368_s17, %s486_s4 }
 0x203   :  { %p374_p11 = pnand %p372_p10, %p369_p9 }
 0x205   :  { %377 = shalt.err (!%p374_p11)
}
 0x206   :  { %213 = dma.vmem_to_hbm [thread:$0]  %s211_s1, 32, %s486_s4, [#allocation4]  }
 0x207   :  { %384 = dma.done.wait [#allocation4], 32  }
 0x208   :  { %385 = vsyncadd [#allocation4], 4294967264 }
 0x209   :  { %217 = vsyncpa [#allocation3], 1 }
 0x20a   :  { %218 = vsyncpa [#allocation6], 1 }
 0x20b   :  { %219 = vsyncpa [#allocation9], 1 }
 0x20c   :  { %220 = vsyncpa [#allocation4], 1 }

</bundles_post_ra>
